<compile_context>
chip_gen: v7x
topology: tpu7x:2x2x1
jax: 0.10.0
libtpu: 0.0.40
codegen_flags: <defaults>
</compile_context>

<pallas_src>
import jax
import jax.numpy as jnp
from jax.experimental import pallas as pl
from jax.experimental.pallas import tpu as pltpu

NEG_SLOPE = 0.01  # PyTorch LeakyReLU default


def _leaky_relu(h):
    return jnp.where(h > 0, h, NEG_SLOPE * h)


def critic_kernel(s_ref, a_ref,
                  w1s_ref, w1a_ref, b1_ref,
                  w2_ref, b2_ref,
                  w3_ref, b3_ref,
                  w4_ref, b4_ref,
                  w5_ref, b5_ref,
                  o_ref):
    # Layer 1: split concat -> two bf16 MXU dots, f32 accumulation.
    s = s_ref[...].astype(jnp.bfloat16)
    a = a_ref[...].astype(jnp.bfloat16)
    h = (jnp.dot(s, w1s_ref[...], preferred_element_type=jnp.float32)
         + jnp.dot(a, w1a_ref[...], preferred_element_type=jnp.float32))
    h = _leaky_relu(h + b1_ref[...])
    # Layer 2: -> 512
    h = jnp.dot(h.astype(jnp.bfloat16), w2_ref[...],
                preferred_element_type=jnp.float32)
    h = _leaky_relu(h + b2_ref[...])
    # Layer 3: -> 256
    h = jnp.dot(h.astype(jnp.bfloat16), w3_ref[...],
                preferred_element_type=jnp.float32)
    h = _leaky_relu(h + b3_ref[...])
    # Layer 4: -> 128
    h = jnp.dot(h.astype(jnp.bfloat16), w4_ref[...],
                preferred_element_type=jnp.float32)
    h = _leaky_relu(h + b4_ref[...])
    # Layer 5: -> 1.  N=1 matmul wastes the MXU; do VPU mul + lane reduce.
    w5 = w5_ref[...].astype(jnp.float32)                     # (1, 128)
    o_ref[...] = jnp.sum(h * w5, axis=-1, keepdims=True) + b5_ref[0]


def init_critic_params(key, observation_size, action_size):
    """PyTorch-style uniform fan-in init; weights stored bf16, biases f32."""
    dims = [observation_size + action_size, 1024, 512, 256, 128, 1]
    raw = []
    for i in range(5):
        key, kw, kb = jax.random.split(key, 3)
        bound = float(dims[i]) ** -0.5
        w = jax.random.uniform(kw, (dims[i], dims[i + 1]),
                               minval=-bound, maxval=bound, dtype=jnp.float32)
        b = jax.random.uniform(kb, (1, dims[i + 1]),
                               minval=-bound, maxval=bound, dtype=jnp.float32)
        raw.append((w, b))
    (w1, b1), (w2, b2), (w3, b3), (w4, b4), (w5, b5) = raw
    params = (
        w1[:observation_size].astype(jnp.bfloat16),   # W1_state  (obs, 1024)
        w1[observation_size:].astype(jnp.bfloat16),   # W1_action (act, 1024)
        b1,                                           # (1, 1024) f32
        w2.astype(jnp.bfloat16), b2,                  # (1024, 512), (1, 512)
        w3.astype(jnp.bfloat16), b3,                  # (512, 256),  (1, 256)
        w4.astype(jnp.bfloat16), b4,                  # (256, 128),  (1, 128)
        w5.T.astype(jnp.bfloat16),                    # (1, 128)
        b5.reshape((1,)),                             # scalar bias for SMEM
    )
    return params


def critic_forward(state, action, params):
    state = state.astype(jnp.float32)
    action = action.astype(jnp.float32)
    B, obs = state.shape
    _, act = action.shape

    # Batch tiling: up to 256 rows per grid step (multiple of 8); pad B.
    if B <= 256:
        tile_b = max(8, ((B + 7) // 8) * 8)
    else:
        tile_b = 256
    B_pad = ((B + tile_b - 1) // tile_b) * tile_b
    if B_pad != B:
        state = jnp.pad(state, ((0, B_pad - B), (0, 0)))
        action = jnp.pad(action, ((0, B_pad - B), (0, 0)))
    grid = (B_pad // tile_b,)

    (w1s, w1a, b1, w2, b2, w3, b3, w4, b4, w5, b5) = params

    def row_spec(n):                       # batch-tiled activations
        return pl.BlockSpec((tile_b, n), lambda i: (i, 0))

    def resident(arr):                     # weights/biases, VMEM-resident
        return pl.BlockSpec(arr.shape, lambda i: (0, 0))

    in_specs = [
        row_spec(obs), row_spec(act),
        resident(w1s), resident(w1a), resident(b1),
        resident(w2), resident(b2),
        resident(w3), resident(b3),
        resident(w4), resident(b4),
        resident(w5),
        pl.BlockSpec(memory_space=pltpu.MemorySpace.SMEM),   # b5 scalar
    ]
    out_specs = pl.BlockSpec((tile_b, 1), lambda i: (i, 0))

    flops = 2 * B_pad * (obs * 1024 + act * 1024 + 1024 * 512
                         + 512 * 256 + 256 * 128 + 128)
    weight_bytes = sum(int(p.size) * p.dtype.itemsize for p in params)
    bytes_accessed = int(B_pad * (obs + act) * 4 + weight_bytes + B_pad * 4)

    out = pl.pallas_call(
        critic_kernel,
        out_shape=jax.ShapeDtypeStruct((B_pad, 1), jnp.float32),
        grid=grid,
        in_specs=in_specs,
        out_specs=out_specs,
        compiler_params=pltpu.CompilerParams(
            dimension_semantics=("parallel",),
            vmem_limit_bytes=16 * 1024 * 1024),
        cost_estimate=pl.CostEstimate(
            flops=flops, transcendentals=0, bytes_accessed=bytes_accessed),
    )(state, action, *params)
    return out[:B]


def critic_reference(state, action, params):
    """Pure-JAX mirror of the kernel math (same bf16 casts / f32 accum)."""
    (w1s, w1a, b1, w2, b2, w3, b3, w4, b4, w5, b5) = params
    s = state.astype(jnp.float32).astype(jnp.bfloat16)
    a = action.astype(jnp.float32).astype(jnp.bfloat16)
    h = (jnp.dot(s, w1s, preferred_element_type=jnp.float32)
         + jnp.dot(a, w1a, preferred_element_type=jnp.float32))
    h = _leaky_relu(h + b1)
    h = jnp.dot(h.astype(jnp.bfloat16), w2, preferred_element_type=jnp.float32)
    h = _leaky_relu(h + b2)
    h = jnp.dot(h.astype(jnp.bfloat16), w3, preferred_element_type=jnp.float32)
    h = _leaky_relu(h + b3)
    h = jnp.dot(h.astype(jnp.bfloat16), w4, preferred_element_type=jnp.float32)
    h = _leaky_relu(h + b4)
    return jnp.sum(h * w5.astype(jnp.float32), axis=-1, keepdims=True) + b5[0]


if __name__ == "__main__":
    observation_size = 16
    action_size = 8
    batch = 2

    key = jax.random.PRNGKey(0)
    k_state, k_action, k_params = jax.random.split(key, 3)

    state = jax.random.normal(k_state, (batch, observation_size),
                              dtype=jnp.float32)
    action = jax.random.normal(k_action, (batch, action_size),
                               dtype=jnp.float32)
    params = init_critic_params(k_params, observation_size, action_size)

    out = critic_forward(state, action, params)
    out = jax.block_until_ready(out)

    ref = critic_reference(state, action, params)
    assert out.shape == (batch, 1), out.shape
    assert jnp.allclose(out, ref, atol=1e-3, rtol=1e-3), (out, ref)

    print("KERNEL_OK")
</pallas_src>

<mosaic_0001>
module attributes {stable_mosaic.version = 11 : i64} {
  func.func @critic_kernel(%arg0: i32, %arg1: memref<8x16xf32, #tpu.memory_space<vmem>>, %arg2: memref<8x8xf32, #tpu.memory_space<vmem>>, %arg3: memref<16x1024xbf16, #tpu.memory_space<vmem>>, %arg4: memref<8x1024xbf16, #tpu.memory_space<vmem>>, %arg5: memref<1x1024xf32, #tpu.memory_space<vmem>>, %arg6: memref<1024x512xbf16, #tpu.memory_space<vmem>>, %arg7: memref<1x512xf32, #tpu.memory_space<vmem>>, %arg8: memref<512x256xbf16, #tpu.memory_space<vmem>>, %arg9: memref<1x256xf32, #tpu.memory_space<vmem>>, %arg10: memref<256x128xbf16, #tpu.memory_space<vmem>>, %arg11: memref<1x128xf32, #tpu.memory_space<vmem>>, %arg12: memref<1x128xbf16, #tpu.memory_space<vmem>>, %arg13: memref<1xf32, #tpu.memory_space<smem>>, %arg14: memref<8x1xf32, #tpu.memory_space<vmem>>) attributes {dimension_semantics = [#tpu.dimension_semantics<parallel>], iteration_bounds = array<i64: 1>, scalar_prefetch = 0 : i64, scratch_operands = 0 : i64, tpu.core_type = #tpu.core_type<tc>, window_params = [{transform_indices = @transform_0, window_bounds = array<i64: 8, 16>}, {transform_indices = @transform_1, window_bounds = array<i64: 8, 8>}, {pipeline_mode = #tpu.pipeline_mode<synchronous>, transform_indices = @transform_2, window_bounds = array<i64: 16, 1024>}, {pipeline_mode = #tpu.pipeline_mode<synchronous>, transform_indices = @transform_3, window_bounds = array<i64: 8, 1024>}, {pipeline_mode = #tpu.pipeline_mode<synchronous>, transform_indices = @transform_4, window_bounds = array<i64: 1, 1024>}, {pipeline_mode = #tpu.pipeline_mode<synchronous>, transform_indices = @transform_5, window_bounds = array<i64: 1024, 512>}, {pipeline_mode = #tpu.pipeline_mode<synchronous>, transform_indices = @transform_6, window_bounds = array<i64: 1, 512>}, {pipeline_mode = #tpu.pipeline_mode<synchronous>, transform_indices = @transform_7, window_bounds = array<i64: 512, 256>}, {pipeline_mode = #tpu.pipeline_mode<synchronous>, transform_indices = @transform_8, window_bounds = array<i64: 1, 256>}, {pipeline_mode = #tpu.pipeline_mode<synchronous>, transform_indices = @transform_9, window_bounds = array<i64: 256, 128>}, {pipeline_mode = #tpu.pipeline_mode<synchronous>, transform_indices = @transform_10, window_bounds = array<i64: 1, 128>}, {pipeline_mode = #tpu.pipeline_mode<synchronous>, transform_indices = @transform_11, window_bounds = array<i64: 1, 128>}, {transform_indices = @transform_12, window_bounds = array<i64: 1>}, {transform_indices = @transform_13, window_bounds = array<i64: 8, 1>}]} {
    %c0 = arith.constant 0 : index
    %c0_0 = arith.constant 0 : index
    %0 = vector.load %arg1[%c0, %c0_0] : memref<8x16xf32, #tpu.memory_space<vmem>>, vector<8x16xf32>
    %1 = arith.truncf %0 : vector<8x16xf32> to vector<8x16xbf16>
    %c0_1 = arith.constant 0 : index
    %c0_2 = arith.constant 0 : index
    %2 = vector.load %arg2[%c0_1, %c0_2] : memref<8x8xf32, #tpu.memory_space<vmem>>, vector<8x8xf32>
    %3 = arith.truncf %2 : vector<8x8xf32> to vector<8x8xbf16>
    %c0_3 = arith.constant 0 : index
    %c0_4 = arith.constant 0 : index
    %4 = vector.load %arg3[%c0_3, %c0_4] : memref<16x1024xbf16, #tpu.memory_space<vmem>>, vector<16x1024xbf16>
    %cst = arith.constant dense<0.000000e+00> : vector<8x1024xf32>
    %5 = tpu.matmul %1, %4, %cst {dimension_numbers = #tpu.dot_dimension_numbers<[1], [0], [0], [1], [0, 0, 1, 1], [], []>} : vector<8x16xbf16>, vector<16x1024xbf16>, vector<8x1024xf32> -> vector<8x1024xf32>
    %c0_5 = arith.constant 0 : index
    %c0_6 = arith.constant 0 : index
    %6 = vector.load %arg4[%c0_5, %c0_6] : memref<8x1024xbf16, #tpu.memory_space<vmem>>, vector<8x1024xbf16>
    %cst_7 = arith.constant dense<0.000000e+00> : vector<8x1024xf32>
    %7 = tpu.matmul %3, %6, %cst_7 {dimension_numbers = #tpu.dot_dimension_numbers<[1], [0], [0], [1], [0, 0, 1, 1], [], []>} : vector<8x8xbf16>, vector<8x1024xbf16>, vector<8x1024xf32> -> vector<8x1024xf32>
    %8 = arith.addf %5, %7 : vector<8x1024xf32>
    %c0_8 = arith.constant 0 : index
    %c0_9 = arith.constant 0 : index
    %9 = vector.load %arg5[%c0_8, %c0_9] : memref<1x1024xf32, #tpu.memory_space<vmem>>, vector<1x1024xf32>
    %10 = vector.broadcast %9 : vector<1x1024xf32> to vector<8x1024xf32>
    %11 = arith.addf %8, %10 : vector<8x1024xf32>
    %cst_10 = arith.constant 0.000000e+00 : f32
    %12 = vector.broadcast %cst_10 : f32 to vector<8x1024xf32>
    %13 = arith.cmpf ogt, %11, %12 : vector<8x1024xf32>
    %cst_11 = arith.constant 0.00999999977 : f32
    %14 = vector.broadcast %cst_11 : f32 to vector<8x1024xf32>
    %15 = arith.mulf %14, %11 : vector<8x1024xf32>
    %16 = arith.select %13, %11, %15 : vector<8x1024xi1>, vector<8x1024xf32>
    %17 = arith.truncf %16 : vector<8x1024xf32> to vector<8x1024xbf16>
    %c0_12 = arith.constant 0 : index
    %c0_13 = arith.constant 0 : index
    %18 = vector.load %arg6[%c0_12, %c0_13] : memref<1024x512xbf16, #tpu.memory_space<vmem>>, vector<1024x512xbf16>
    %cst_14 = arith.constant dense<0.000000e+00> : vector<8x512xf32>
    %19 = tpu.matmul %17, %18, %cst_14 {dimension_numbers = #tpu.dot_dimension_numbers<[1], [0], [0], [1], [0, 0, 1, 1], [], []>} : vector<8x1024xbf16>, vector<1024x512xbf16>, vector<8x512xf32> -> vector<8x512xf32>
    %c0_15 = arith.constant 0 : index
    %c0_16 = arith.constant 0 : index
    %20 = vector.load %arg7[%c0_15, %c0_16] : memref<1x512xf32, #tpu.memory_space<vmem>>, vector<1x512xf32>
    %21 = vector.broadcast %20 : vector<1x512xf32> to vector<8x512xf32>
    %22 = arith.addf %19, %21 : vector<8x512xf32>
    %cst_17 = arith.constant 0.000000e+00 : f32
    %23 = vector.broadcast %cst_17 : f32 to vector<8x512xf32>
    %24 = arith.cmpf ogt, %22, %23 : vector<8x512xf32>
    %cst_18 = arith.constant 0.00999999977 : f32
    %25 = vector.broadcast %cst_18 : f32 to vector<8x512xf32>
    %26 = arith.mulf %25, %22 : vector<8x512xf32>
    %27 = arith.select %24, %22, %26 : vector<8x512xi1>, vector<8x512xf32>
    %28 = arith.truncf %27 : vector<8x512xf32> to vector<8x512xbf16>
    %c0_19 = arith.constant 0 : index
    %c0_20 = arith.constant 0 : index
    %29 = vector.load %arg8[%c0_19, %c0_20] : memref<512x256xbf16, #tpu.memory_space<vmem>>, vector<512x256xbf16>
    %cst_21 = arith.constant dense<0.000000e+00> : vector<8x256xf32>
    %30 = tpu.matmul %28, %29, %cst_21 {dimension_numbers = #tpu.dot_dimension_numbers<[1], [0], [0], [1], [0, 0, 1, 1], [], []>} : vector<8x512xbf16>, vector<512x256xbf16>, vector<8x256xf32> -> vector<8x256xf32>
    %c0_22 = arith.constant 0 : index
    %c0_23 = arith.constant 0 : index
    %31 = vector.load %arg9[%c0_22, %c0_23] : memref<1x256xf32, #tpu.memory_space<vmem>>, vector<1x256xf32>
    %32 = vector.broadcast %31 : vector<1x256xf32> to vector<8x256xf32>
    %33 = arith.addf %30, %32 : vector<8x256xf32>
    %cst_24 = arith.constant 0.000000e+00 : f32
    %34 = vector.broadcast %cst_24 : f32 to vector<8x256xf32>
    %35 = arith.cmpf ogt, %33, %34 : vector<8x256xf32>
    %cst_25 = arith.constant 0.00999999977 : f32
    %36 = vector.broadcast %cst_25 : f32 to vector<8x256xf32>
    %37 = arith.mulf %36, %33 : vector<8x256xf32>
    %38 = arith.select %35, %33, %37 : vector<8x256xi1>, vector<8x256xf32>
    %39 = arith.truncf %38 : vector<8x256xf32> to vector<8x256xbf16>
    %c0_26 = arith.constant 0 : index
    %c0_27 = arith.constant 0 : index
    %40 = vector.load %arg10[%c0_26, %c0_27] : memref<256x128xbf16, #tpu.memory_space<vmem>>, vector<256x128xbf16>
    %cst_28 = arith.constant dense<0.000000e+00> : vector<8x128xf32>
    %41 = tpu.matmul %39, %40, %cst_28 {dimension_numbers = #tpu.dot_dimension_numbers<[1], [0], [0], [1], [0, 0, 1, 1], [], []>} : vector<8x256xbf16>, vector<256x128xbf16>, vector<8x128xf32> -> vector<8x128xf32>
    %c0_29 = arith.constant 0 : index
    %c0_30 = arith.constant 0 : index
    %42 = vector.load %arg11[%c0_29, %c0_30] : memref<1x128xf32, #tpu.memory_space<vmem>>, vector<1x128xf32>
    %43 = vector.broadcast %42 : vector<1x128xf32> to vector<8x128xf32>
    %44 = arith.addf %41, %43 : vector<8x128xf32>
    %cst_31 = arith.constant 0.000000e+00 : f32
    %45 = vector.broadcast %cst_31 : f32 to vector<8x128xf32>
    %46 = arith.cmpf ogt, %44, %45 : vector<8x128xf32>
    %cst_32 = arith.constant 0.00999999977 : f32
    %47 = vector.broadcast %cst_32 : f32 to vector<8x128xf32>
    %48 = arith.mulf %47, %44 : vector<8x128xf32>
    %49 = arith.select %46, %44, %48 : vector<8x128xi1>, vector<8x128xf32>
    %c0_33 = arith.constant 0 : index
    %c0_34 = arith.constant 0 : index
    %50 = vector.load %arg12[%c0_33, %c0_34] : memref<1x128xbf16, #tpu.memory_space<vmem>>, vector<1x128xbf16>
    %51 = arith.extf %50 : vector<1x128xbf16> to vector<1x128xf32>
    %52 = vector.broadcast %51 : vector<1x128xf32> to vector<8x128xf32>
    %53 = arith.mulf %49, %52 : vector<8x128xf32>
    %cst_35 = arith.constant dense<0.000000e+00> : vector<8xf32>
    %54 = vector.multi_reduction <add>, %53, %cst_35 [1] : vector<8x128xf32> to vector<8xf32>
    %55 = vector.shape_cast %54 : vector<8xf32> to vector<8x1xf32>
    %c0_36 = arith.constant 0 : index
    %56 = memref.load %arg13[%c0_36] : memref<1xf32, #tpu.memory_space<smem>>
    %57 = vector.broadcast %56 : f32 to vector<8x1xf32>
    %58 = arith.addf %55, %57 : vector<8x1xf32>
    %c0_37 = arith.constant 0 : index
    %c0_38 = arith.constant 0 : index
    %59 = vector.load %arg14[%c0_37, %c0_38] : memref<8x1xf32, #tpu.memory_space<vmem>>, vector<8x1xf32>
    tpu.vector_store %arg14[%c0_37, %c0_38], %58 {strides = array<i32>} : memref<8x1xf32, #tpu.memory_space<vmem>>, vector<8x1xf32>,
    return
  }
  func.func @transform_0(%arg0: i32) -> (i32, i32) {
    %c0_i32 = arith.constant 0 : i32
    %c0_i32_0 = arith.constant 0 : i32
    return %arg0, %c0_i32 : i32, i32
  }
  func.func @transform_1(%arg0: i32) -> (i32, i32) {
    %c0_i32 = arith.constant 0 : i32
    %c0_i32_0 = arith.constant 0 : i32
    return %arg0, %c0_i32 : i32, i32
  }
  func.func @transform_2(%arg0: i32) -> (i32, i32) {
    %c0_i32 = arith.constant 0 : i32
    %c0_i32_0 = arith.constant 0 : i32
    %c0_i32_1 = arith.constant 0 : i32
    return %c0_i32, %c0_i32_0 : i32, i32
  }
  func.func @transform_3(%arg0: i32) -> (i32, i32) {
    %c0_i32 = arith.constant 0 : i32
    %c0_i32_0 = arith.constant 0 : i32
    %c0_i32_1 = arith.constant 0 : i32
    return %c0_i32, %c0_i32_0 : i32, i32
  }
  func.func @transform_4(%arg0: i32) -> (i32, i32) {
    %c0_i32 = arith.constant 0 : i32
    %c0_i32_0 = arith.constant 0 : i32
    %c0_i32_1 = arith.constant 0 : i32
    return %c0_i32, %c0_i32_0 : i32, i32
  }
  func.func @transform_5(%arg0: i32) -> (i32, i32) {
    %c0_i32 = arith.constant 0 : i32
    %c0_i32_0 = arith.constant 0 : i32
    %c0_i32_1 = arith.constant 0 : i32
    return %c0_i32, %c0_i32_0 : i32, i32
  }
  func.func @transform_6(%arg0: i32) -> (i32, i32) {
    %c0_i32 = arith.constant 0 : i32
    %c0_i32_0 = arith.constant 0 : i32
    %c0_i32_1 = arith.constant 0 : i32
    return %c0_i32, %c0_i32_0 : i32, i32
  }
  func.func @transform_7(%arg0: i32) -> (i32, i32) {
    %c0_i32 = arith.constant 0 : i32
    %c0_i32_0 = arith.constant 0 : i32
    %c0_i32_1 = arith.constant 0 : i32
    return %c0_i32, %c0_i32_0 : i32, i32
  }
  func.func @transform_8(%arg0: i32) -> (i32, i32) {
    %c0_i32 = arith.constant 0 : i32
    %c0_i32_0 = arith.constant 0 : i32
    %c0_i32_1 = arith.constant 0 : i32
    return %c0_i32, %c0_i32_0 : i32, i32
  }
  func.func @transform_9(%arg0: i32) -> (i32, i32) {
    %c0_i32 = arith.constant 0 : i32
    %c0_i32_0 = arith.constant 0 : i32
    %c0_i32_1 = arith.constant 0 : i32
    return %c0_i32, %c0_i32_0 : i32, i32
  }
  func.func @transform_10(%arg0: i32) -> (i32, i32) {
    %c0_i32 = arith.constant 0 : i32
    %c0_i32_0 = arith.constant 0 : i32
    %c0_i32_1 = arith.constant 0 : i32
    return %c0_i32, %c0_i32_0 : i32, i32
  }
  func.func @transform_11(%arg0: i32) -> (i32, i32) {
    %c0_i32 = arith.constant 0 : i32
    %c0_i32_0 = arith.constant 0 : i32
    %c0_i32_1 = arith.constant 0 : i32
    return %c0_i32, %c0_i32_0 : i32, i32
  }
  func.func @transform_12(%arg0: i32) -> i32 {
    %c0_i32 = arith.constant 0 : i32
    %c0_i32_0 = arith.constant 0 : i32
    return %c0_i32 : i32
  }
  func.func @transform_13(%arg0: i32) -> (i32, i32) {
    %c0_i32 = arith.constant 0 : i32
    %c0_i32_0 = arith.constant 0 : i32
    return %arg0, %c0_i32 : i32, i32
  }
}

</mosaic_0001>

<bundles_post_ra>
// kernel: tpu_custom_call.1
= control target key start
LH: loop header
LB: loop body
LE: loop exit
PB: predicated region body
PF: predicated region fallthrough
CT: control target
= control target key end

     0   :  { %19 = vsyncpa [#allocation4], 0  ;;  %s4670_s0 = inlined_call_operand.hbm [shape: f32[8,16], index: 0, kind: input, shape index: {}]   ;;  %s4671_s1 = inlined_call_operand.hbm [shape: f32[8,8], index: 1, kind: input, shape index: {}]   ;;  %s4672_s2 = inlined_call_operand.hbm [shape: bf16[16,1024], index: 2, kind: input, shape index: {}]   ;;  %s4673_s3 = inlined_call_operand.hbm [shape: bf16[8,1024], index: 3, kind: input, shape index: {}]   ;;  %s4674_s4 = inlined_call_operand.vmem [shape: f32[1,1024], index: 4, kind: input, shape index: {}]   ;;  %s4675_s5 = inlined_call_operand.hbm [shape: bf16[1024,512], index: 5, kind: input, shape index: {}]   ;;  %s4676_s6 = inlined_call_operand.vmem [shape: f32[1,512], index: 6, kind: input, shape index: {}]   ;;  %s4677_s7 = inlined_call_operand.hbm [shape: bf16[512,256], index: 7, kind: input, shape index: {}]   ;;  %s4678_s8 = inlined_call_operand.vmem [shape: f32[1,256], index: 8, kind: input, shape index: {}]   ;;  %s4679_s9 = inlined_call_operand.hbm [shape: bf16[256,128], index: 9, kind: input, shape index: {}]   ;;  %s4680_s10 = inlined_call_operand.vmem [shape: f32[1,128], index: 10, kind: input, shape index: {}]   ;;  %s4681_s11 = inlined_call_operand.vmem [shape: bf16[1,128], index: 11, kind: input, shape index: {}]   ;;  %s4682_s12 = inlined_call_operand.<no memory space> [shape: f32[1], index: 12, kind: input, shape index: {}]   ;;  %s4683_s13 = inlined_call_operand.vmem [shape: f32[8,1], index: 13, kind: output, shape index: {}]  }
   0x1   :  { %20 = vsyncpa [#allocation6], 0 }
   0x2   :  { %21 = vsyncpa [#allocation9], 0 }
   0x3   :  { %22 = vsyncpa [#allocation12], 0  ;;  %s4343_s25 = smov [#allocation5]   ;;  %s4344_s27 = smov [#allocation8]  }
   0x4   :  { %s39_s26 = sshll.u32 %s4343_s25, 4  ;;  %s61_s28 = sshll.u32 %s4344_s27, 4  ;;  %s40_s26 = int_to_ptr.vmem [resolvable:$true] %s39_s26  ;;  %s62_s28 = int_to_ptr.vmem [resolvable:$true] %s61_s28 }
   0x5   :  { %s4181_s14 = scalar_lea.hbm %s4671_s1, 128 }
   0x6   :  { %p4182_p0 = scmp.ne.s32.totalorder %s4671_s1, %s4181_s14  ;;  %p4185_p1 = scmp.lt.u32.totalorder %s4181_s14, %s4671_s1 }
   0x8   :  { %p4187_p2 = pnand %p4185_p1, %p4182_p0 }
   0xa   :  { %4190 = shalt.err (!%p4187_p2)
}
   0xb   :  { %s4191_s19 = scalar_lea.vmem %s40_s26, 128  ;;  %p4196_p4 = scmp.lt.s32.totalorder %s40_s26, %s40_s26 }
   0xc   :  { %p4192_p3 = scmp.ne.s32.totalorder %s40_s26, %s4191_s19  ;;  %p4197_p5 = scmp.lt.s32.totalorder %s4191_s19, %s4191_s19 }
   0xe   :  { %p4198_p6 = por %p4197_p5, %p4196_p4 }
  0x10   :  { %p4199_p7 = pnand %p4198_p6, %p4192_p3 }
  0x12   :  { %4202 = shalt.err (!%p4199_p7)
}
  0x13   :  { %42 = dma.hbm_to_vmem [thread:$0]  %s4671_s1, 128, %s40_s26, [#allocation6]  }
  0x14   :  { %s4203_s24 = scalar_lea.hbm %s4673_s3, 512 }
  0x15   :  { %p4204_p8 = scmp.ne.s32.totalorder %s4673_s3, %s4203_s24  ;;  %p4207_p9 = scmp.lt.u32.totalorder %s4203_s24, %s4673_s3 }
  0x17   :  { %p4209_p10 = pnand %p4207_p9, %p4204_p8 }
  0x19   :  { %4212 = shalt.err (!%p4209_p10)
}
  0x1a   :  { %s4213_s14 = scalar_lea.vmem %s62_s28, 512  ;;  %p4218_p12 = scmp.lt.s32.totalorder %s62_s28, %s62_s28 }
  0x1b   :  { %p4214_p11 = scmp.ne.s32.totalorder %s62_s28, %s4213_s14  ;;  %p4219_p13 = scmp.lt.s32.totalorder %s4213_s14, %s4213_s14 }
  0x1d   :  { %p4220_p0 = por %p4219_p13, %p4218_p12 }
  0x1f   :  { %p4221_p1 = pnand %p4220_p0, %p4214_p11 }
  0x21   :  { %4224 = shalt.err (!%p4221_p1)
}
  0x22   :  { %64 = dma.hbm_to_vmem [thread:$0]  %s4673_s3, 512, %s62_s28, [#allocation9]  }
  0x23   :  { %s4345_s15 = smov [#allocation11]   ;;  %s4225_s19 = scalar_lea.hbm %s4677_s7, 8192 }
  0x24   :  { %s86_s16 = sshll.u32 %s4345_s15, 4  ;;  %p4226_p2 = scmp.ne.s32.totalorder %s4677_s7, %s4225_s19  ;;  %s87_s16 = int_to_ptr.vmem [resolvable:$true] %s86_s16 }
  0x25   :  { %p4229_p3 = scmp.lt.u32.totalorder %s4225_s19, %s4677_s7 }
  0x27   :  { %p4231_p4 = pnand %p4229_p3, %p4226_p2 }
  0x29   :  { %4234 = shalt.err (!%p4231_p4)
}
  0x2a   :  { %s4235_s24 = scalar_lea.vmem %s87_s16, 8192  ;;  %p4240_p6 = scmp.lt.s32.totalorder %s87_s16, %s87_s16 }
  0x2b   :  { %p4236_p5 = scmp.ne.s32.totalorder %s87_s16, %s4235_s24  ;;  %p4241_p7 = scmp.lt.s32.totalorder %s4235_s24, %s4235_s24 }
  0x2d   :  { %p4242_p8 = por %p4241_p7, %p4240_p6 }
  0x2f   :  { %p4243_p9 = pnand %p4242_p8, %p4236_p5 }
  0x31   :  { %4246 = shalt.err (!%p4243_p9)
}
  0x32   :  { %s4346_s3 = smov 128   ;;  %s4347_s28 = smov 8  }
  0x33   :  { %92 = dma.hbm_to_vmem [thread:$0]  %s4677_s7, 8192, %s87_s16, [#allocation12], %s4346_s3, %s4346_s3, %s4347_s28  }
  0x34   :  { %s4348_s29 = smov [#allocation3]   ;;  %s4349_s14 = smov [#allocation7]  }
  0x35   :  { %s29_s30 = sshll.u32 %s4348_s29, 4  ;;  %s48_s1 = sshll.u32 %s4349_s14, 4  ;;  %s30_s30 = int_to_ptr.vmem [resolvable:$true] %s29_s30  ;;  %s49_s1 = int_to_ptr.vmem [resolvable:$true] %s48_s1 }
  0x36   :  { %s4247_s17 = scalar_lea.hbm %s4670_s0, 128 }
  0x37   :  { %p4248_p10 = scmp.ne.s32.totalorder %s4670_s0, %s4247_s17  ;;  %p4251_p11 = scmp.lt.u32.totalorder %s4247_s17, %s4670_s0 }
  0x39   :  { %p4253_p12 = pnand %p4251_p11, %p4248_p10 }
  0x3b   :  { %4256 = shalt.err (!%p4253_p12)
}
  0x3c   :  { %s4257_s7 = scalar_lea.vmem %s30_s30, 128  ;;  %p4262_p0 = scmp.lt.s32.totalorder %s30_s30, %s30_s30 }
  0x3d   :  { %p4258_p13 = scmp.ne.s32.totalorder %s30_s30, %s4257_s7  ;;  %p4263_p1 = scmp.lt.s32.totalorder %s4257_s7, %s4257_s7 }
  0x3f   :  { %p4264_p2 = por %p4263_p1, %p4262_p0 }
  0x41   :  { %p4265_p3 = pnand %p4264_p2, %p4258_p13 }
  0x43   :  { %4268 = shalt.err (!%p4265_p3)
}
  0x44   :  { %32 = dma.hbm_to_vmem [thread:$0]  %s4670_s0, 128, %s30_s30, [#allocation4]  }
  0x45   :  { %s4269_s3 = scalar_lea.hbm %s4672_s2, 1024 }
  0x46   :  { %p4270_p4 = scmp.ne.s32.totalorder %s4672_s2, %s4269_s3  ;;  %p4273_p5 = scmp.lt.u32.totalorder %s4269_s3, %s4672_s2 }
  0x48   :  { %p4275_p6 = pnand %p4273_p5, %p4270_p4 }
  0x4a   :  { %4278 = shalt.err (!%p4275_p6)
}
  0x4b   :  { %s4279_s14 = scalar_lea.vmem %s49_s1, 1024  ;;  %p4284_p8 = scmp.lt.s32.totalorder %s49_s1, %s49_s1 }
  0x4c   :  { %p4280_p7 = scmp.ne.s32.totalorder %s49_s1, %s4279_s14  ;;  %p4285_p9 = scmp.lt.s32.totalorder %s4279_s14, %s4279_s14 }
  0x4e   :  { %p4286_p10 = por %p4285_p9, %p4284_p8 }
  0x50   :  { %p4287_p11 = pnand %p4286_p10, %p4280_p7 }
  0x52   :  { %4290 = shalt.err (!%p4287_p11)
}
  0x53   :  { %s4350_s0 = smov 512   ;;  %s4351_s30 = smov 32  }
  0x54   :  { %54 = dma.hbm_to_vmem [thread:$0]  %s4672_s2, 1024, %s49_s1, [#allocation6], %s4350_s0, %s4350_s0, %s4351_s30  }
  0x55   :  { %s4352_s17 = smov [#allocation10]   ;;  %s4291_s21 = scalar_lea.hbm %s4675_s5, 32768 }
  0x56   :  { %s72_s18 = sshll.u32 %s4352_s17, 4  ;;  %p4292_p12 = scmp.ne.s32.totalorder %s4675_s5, %s4291_s21  ;;  %s73_s18 = int_to_ptr.vmem [resolvable:$true] %s72_s18 }
  0x57   :  { %p4295_p13 = scmp.lt.u32.totalorder %s4291_s21, %s4675_s5 }
  0x59   :  { %p4297_p0 = pnand %p4295_p13, %p4292_p12 }
  0x5b   :  { %4300 = shalt.err (!%p4297_p0)
}
  0x5c   :  { %s4301_s24 = scalar_lea.vmem %s73_s18, 32768  ;;  %p4306_p2 = scmp.lt.s32.totalorder %s73_s18, %s73_s18 }
  0x5d   :  { %p4302_p1 = scmp.ne.s32.totalorder %s73_s18, %s4301_s24  ;;  %p4307_p3 = scmp.lt.s32.totalorder %s4301_s24, %s4301_s24 }
  0x5f   :  { %p4308_p4 = por %p4307_p3, %p4306_p2 }
  0x61   :  { %p4309_p5 = pnand %p4308_p4, %p4302_p1 }
  0x63   :  { %4312 = shalt.err (!%p4309_p5)
}
  0x64   :  { %s4353_s2 = smov 256   ;;  %s4354_s1 = smov 16  }
  0x65   :  { %78 = dma.hbm_to_vmem [thread:$0]  %s4675_s5, 32768, %s73_s18, [#allocation9], %s4353_s2, %s4353_s2, %s4354_s1  }
  0x66   :  { %s4355_s25 = smov [#allocation13]   ;;  %s4313_s0 = scalar_lea.hbm %s4679_s9, 2048 }
  0x67   :  { %s100_s27 = sshll.u32 %s4355_s25, 4  ;;  %p4314_p6 = scmp.ne.s32.totalorder %s4679_s9, %s4313_s0  ;;  %s101_s27 = int_to_ptr.vmem [resolvable:$true] %s100_s27 }
  0x68   :  { %p4317_p7 = scmp.lt.u32.totalorder %s4313_s0, %s4679_s9 }
  0x6a   :  { %p4319_p8 = pnand %p4317_p7, %p4314_p6 }
  0x6c   :  { %4322 = shalt.err (!%p4319_p8)
}
  0x6d   :  { %s4323_s19 = scalar_lea.vmem %s101_s27, 2048  ;;  %p4328_p10 = scmp.lt.s32.totalorder %s101_s27, %s101_s27 }
  0x6e   :  { %p4324_p9 = scmp.ne.s32.totalorder %s101_s27, %s4323_s19  ;;  %p4329_p11 = scmp.lt.s32.totalorder %s4323_s19, %s4323_s19 }
  0x70   :  { %p4330_p12 = por %p4329_p11, %p4328_p10 }
  0x72   :  { %p4331_p13 = pnand %p4330_p12, %p4324_p9 }
  0x74   :  { %4334 = shalt.err (!%p4331_p13)
}
  0x75   :  { %s4356_s5 = smov 64   ;;  %s4357_s18 = smov 4  }
  0x76   :  { %106 = dma.hbm_to_vmem [thread:$0]  %s4679_s9, 2048, %s101_s27, [#allocation12], %s4356_s5, %s4356_s5, %s4357_s18  }
  0x77   :  { %4335 = dma.done.wait [#allocation4], 128  }
  0x78   :  { %4336 = vsyncadd [#allocation4], 4294967168 }
  0x79   :  { %4337 = dma.done.wait [#allocation6], 1152  }
  0x7a   :  { %4338 = vsyncadd [#allocation6], 4294966144 }
  0x7b   :  { %4339 = dma.done.wait [#allocation9], 33280  }
  0x7c   :  { %4340 = vsyncadd [#allocation9], 4294934016 }
  0x7d   :  { %4341 = dma.done.wait [#allocation12], 10240  }
  0x7e   :  { %4342 = vsyncadd [#allocation12], 4294957056  ;;  %v4358_v0 = vmov 0   ;;  %v147_v1 = vld [vmem:[#allocation8] sm:$0xff]  ;;  %vm175_vm0 = vcmask 1043456   ;;  %v137_v2 = vld [vmem:[#allocation5] sm:$0xff] }
  0x7f   :  { %232 = vmatprep.mubr.bf16.mxu0 %v4358_v0  ;;  %481 = vmatprep.mubr.bf16.mxu1 %v4358_v0  ;;  %v148_v3 = vld [vmem:[#allocation8 + $0x8] sm:$0xff]  ;;  %v3243_v4 = vcombine.high %v147_v1, %v147_v1  ;;  %v3242_v5 = vcombine.low %v147_v1, %v147_v1  ;;  %v149_v12 = vld [vmem:[#allocation8 + $0x10] sm:$0xff]  ;;  %v142_v14 = vld [vmem:[#allocation7 + $0x18] sm:$0xff]  ;;  %v138_v16 = vpack.c.bf16 %v137_v2, %v137_v2  ;;  %vm171_vm1 = vcmask 64512  }
  0x80   :  { %v3245_v6 = vcombine.high %v148_v3, %v148_v3  ;;  %v140_v7 = vld [vmem:[#allocation7 + $0x8] sm:$0xff]  ;;  %v3244_v9 = vcombine.low %v148_v3, %v148_v3  ;;  %v135_v13 = vld [vmem:[#allocation3] sm:$0xff]  ;;  %v146_v17 = vld [vmem:[#allocation7 + $0x38] sm:$0xff]  ;;  %v3247_v20 = vcombine.high %v149_v12, %v149_v12  ;;  %vm404_vm2 = vcmask 130048  }
  0x81   :  { %v144_v8 = vld [vmem:[#allocation7 + $0x28] sm:$0xff]  ;;  %3250 = vmatprep.subr.msk.bf16.mxu0 %vm175_vm0, %v3243_v4  ;;  %v177_v15 = vsel %vm175_vm0, %v3242_v5, 0  ;;  %v3265_v18 = vcombine.high %v142_v14, %v146_v17  ;;  %v4519_v21 = vpack.c.bf16 %v135_v13, %v135_v13  ;;  %v3264_v22 = vcombine.low %v142_v14, %v146_v17  ;;  %v150_v24 = vld [vmem:[#allocation8 + $0x18] sm:$0xff]  ;;  %v3705_v27 = vld [vmem:[#allocation10 + $0x4] ss:$16 sps:$4 sm:$0xff]  }
  0x82   :  { %v3261_v10 = vcombine.high %v140_v7, %v144_v8  ;;  %v3260_v11 = vcombine.low %v140_v7, %v144_v8  ;;  %201 = vmatpush1.bf16.msra.mxu0 %v177_v15  ;;  %v183_v19 = vsel %vm175_vm0, %v3244_v9, 0  ;;  %v3246_v23 = vcombine.low %v149_v12, %v149_v12  ;;  %v3703_v28 = vld [vmem:[#allocation10] ss:$16 sps:$4 sm:$0xff]   ;;  %v3711_v29 = vld [vmem:[#allocation10 + $0x24] ss:$16 sps:$4 sm:$0xff]  }
  0x83   :  { %3252 = vmatprep.subr.msk.bf16.mxu0 %vm175_vm0, %v3245_v6  ;;  %v3249_v26 = vcombine.high %v150_v24, %v150_v24  ;;  %v3248_v30 = vcombine.low %v150_v24, %v150_v24  ;;  %v139_v31 = vld [vmem:[#allocation7] sm:$0xff]  ;;  %v141_v39 = vld [vmem:[#allocation7 + $0x10] sm:$0xff] }
  0x84   :  { %449 = vmatprep.subr.bf16.mxu1 %v3261_v10  ;;  %v189_v25 = vsel %vm175_vm0, %v3246_v23, 0  ;;  %v143_v32 = vld [vmem:[#allocation7 + $0x20] sm:$0xff]  ;;  %v145_v40 = vld [vmem:[#allocation7 + $0x30] sm:$0xff] }
  0x85   :  { %450 = vmatpush1.bf16.msra.mxu1 %v3260_v11  ;;  %3251 = vmatmul.mubr.msk.bf16.vlgmr.msra.gmra.mrb[0].mxu0 %vm171_vm1, %v138_v16  ;;  %v3709_v33 = vld [vmem:[#allocation10 + $0x20] ss:$16 sps:$4 sm:$0xff]   ;;  %v3717_v34 = vld [vmem:[#allocation10 + $0x44] ss:$16 sps:$4 sm:$0xff]   ;;  %v195_v35 = vsel %vm175_vm0, %v3248_v30, 0  ;;  %v3259_v36 = vcombine.high %v139_v31, %v143_v32  ;;  %v3258_v43 = vcombine.low %v139_v31, %v143_v32  ;;  %v3263_v45 = vcombine.high %v141_v39, %v145_v40 }
  0x86   :  { %531 = vmatprep.subr.bf16.mxu1 %v3265_v18  ;;  %242 = vmatpush1.bf16.msra.mxu0 %v183_v19  ;;  %v3715_v37 = vld [vmem:[#allocation10 + $0x40] ss:$16 sps:$4 sm:$0xff]   ;;  %v3723_v38 = vld [vmem:[#allocation10 + $0x64] ss:$16 sps:$4 sm:$0xff]   ;;  %v3262_v49 = vcombine.low %v141_v39, %v145_v40 }
  0x87   :  { %273 = vmatprep.mubr.bf16.mxu0 %v4358_v0  ;;  %3254 = vmatprep.subr.msk.bf16.mxu0 %vm175_vm0, %v3247_v20  ;;  %v3721_v41 = vld [vmem:[#allocation10 + $0x60] ss:$16 sps:$4 sm:$0xff]   ;;  %v3729_v42 = vld [vmem:[#allocation10 + $0x84] ss:$16 sps:$4 sm:$0xff]  }
  0x88   :  { %3267 = vmatmul.mubr.msk.bf16.vlgmr.msra.gmra.mrb[0].mxu1 %vm404_vm2, %v4519_v21  ;;  %v3727_v44 = vld [vmem:[#allocation10 + $0x80] ss:$16 sps:$4 sm:$0xff]   ;;  %v3735_v46 = vld [vmem:[#allocation10 + $0xa4] ss:$16 sps:$4 sm:$0xff]  }
  0x89   :  { %532 = vmatpush1.bf16.msra.mxu1 %v3264_v22  ;;  %563 = vmatprep.mubr.bf16.mxu1 %v4358_v0  ;;  %v3733_v47 = vld [vmem:[#allocation10 + $0xa0] ss:$16 sps:$4 sm:$0xff]   ;;  %v3687_v48 = vld [vmem:[#allocation10 + $0x204] ss:$16 sps:$4 sm:$0xff]  }
  0x8a   :  { %2212 = vmatprep.subr.bf16.mxu1 %v3705_v27  ;;  %v3685_v50 = vld [vmem:[#allocation10 + $0x200] ss:$16 sps:$4 sm:$0xff]   ;;  %v3690_v51 = vld [vmem:[#allocation10 + $0x224] ss:$16 sps:$4 sm:$0xff]   ;;  %v574_v27 = vlaneseq }
  0x8b   :  { %v3688_v52 = vld [vmem:[#allocation10 + $0x220] ss:$16 sps:$4 sm:$0xff]   ;;  %v3693_v53 = vld [vmem:[#allocation10 + $0x244] ss:$16 sps:$4 sm:$0xff]  }
  0x8c   :  { %v3691_v54 = vld [vmem:[#allocation10 + $0x240] ss:$16 sps:$4 sm:$0xff]   ;;  %v3696_v55 = vld [vmem:[#allocation10 + $0x264] ss:$16 sps:$4 sm:$0xff]   ;;  %v4543_v31 = vshrl.u32 %v574_v27, 7 }
  0x8d   :  { %3253 = vmatmul.mubr.msk.bf16.vlgmr.msra.gmra.mrb[4].mxu0 %vm171_vm1, %v138_v16  ;;  %v3694_v56 = vld [vmem:[#allocation10 + $0x260] ss:$16 sps:$4 sm:$0xff]   ;;  %v3699_v57 = vld [vmem:[#allocation10 + $0x284] ss:$16 sps:$4 sm:$0xff]  }
  0x8e   :  { %283 = vmatpush1.bf16.msra.mxu0 %v189_v25  ;;  %314 = vmatprep.mubr.bf16.mxu0 %v4358_v0  ;;  %v3697_v58 = vld [vmem:[#allocation10 + $0x280] ss:$16 sps:$4 sm:$0xff]   ;;  %v3702_v59 = vld [vmem:[#allocation10 + $0x2a4] ss:$16 sps:$4 sm:$0xff]  }
  0x8f   :  { %3256 = vmatprep.subr.msk.bf16.mxu0 %vm175_vm0, %v3249_v26  ;;  %v3700_v60 = vld [vmem:[#allocation10 + $0x2a0] ss:$16 sps:$4 sm:$0xff]   ;;  %v3708_v61 = vld [vmem:[#allocation10 + $0x2c4] ss:$16 sps:$4 sm:$0xff]  }
  0x90   :  { %3269 = vmatmul.mubr.msk.bf16.vlgmr.msra.gmra.mrb[4].mxu1 %vm404_vm2, %v4519_v21  ;;  %v3706_v62 = vld [vmem:[#allocation10 + $0x2c0] ss:$16 sps:$4 sm:$0xff]   ;;  %v3714_v63 = vld [vmem:[#allocation10 + $0x2e4] ss:$16 sps:$4 sm:$0xff]  }
  0x91   :  { %2213 = vmatpush1.bf16.msra.mxu1 %v3703_v28  ;;  %v3720_v1 = vld [vmem:[#allocation10 + $0x304] ss:$16 sps:$4 sm:$0xff]   ;;  %v3718_v2 = vld [vmem:[#allocation10 + $0x300] ss:$16 sps:$4 sm:$0xff]  }
  0x92   :  { %2214 = vmatprep.subr.bf16.mxu1 %v3711_v29  ;;  %v3726_v3 = vld [vmem:[#allocation10 + $0x324] ss:$16 sps:$4 sm:$0xff]   ;;  %v3724_v4 = vld [vmem:[#allocation10 + $0x320] ss:$16 sps:$4 sm:$0xff]  }
  0x93   :  { %v3732_v5 = vld [vmem:[#allocation10 + $0x344] ss:$16 sps:$4 sm:$0xff]   ;;  %v3730_v6 = vld [vmem:[#allocation10 + $0x340] ss:$16 sps:$4 sm:$0xff]  }
  0x94   :  { %v3738_v7 = vld [vmem:[#allocation10 + $0x364] ss:$16 sps:$4 sm:$0xff]   ;;  %v3736_v8 = vld [vmem:[#allocation10 + $0x360] ss:$16 sps:$4 sm:$0xff]  }
  0x95   :  { %2215 = vmatpush1.bf16.msra.mxu1 %v3709_v33  ;;  %3255 = vmatmul.mubr.msk.bf16.vlgmr.msra.gmra.mrb[8].mxu0 %vm171_vm1, %v138_v16  ;;  %v3741_v9 = vld [vmem:[#allocation10 + $0xc4] ss:$16 sps:$4 sm:$0xff]   ;;  %v3739_v11 = vld [vmem:[#allocation10 + $0xc0] ss:$16 sps:$4 sm:$0xff]   ;;  %v600_v33 = vsub.s32 6, %v4543_v31 }
  0x96   :  { %2216 = vmatprep.subr.bf16.mxu1 %v3717_v34  ;;  %324 = vmatpush1.bf16.msra.mxu0 %v195_v35  ;;  %v3744_v10 = vld [vmem:[#allocation10 + $0x384] ss:$16 sps:$4 sm:$0xff]   ;;  %v3742_v12 = vld [vmem:[#allocation10 + $0x380] ss:$16 sps:$4 sm:$0xff]   ;;  %v604_v34 = vsub.s32 7, %v4543_v31 }
  0x97   :  { %355 = vmatprep.mubr.bf16.mxu0 %v4358_v0  ;;  %408 = vmatprep.subr.bf16.mxu0 %v3259_v36  ;;  %v3745_v13 = vld [vmem:[#allocation10 + $0xe0] ss:$16 sps:$4 sm:$0xff]   ;;  %v3747_v14 = vld [vmem:[#allocation10 + $0xe4] ss:$16 sps:$4 sm:$0xff]  }
  0x98   :  { %v3748_v15 = vld [vmem:[#allocation10 + $0x3a0] ss:$16 sps:$4 sm:$0xff]   ;;  %v3753_v17 = vld [vmem:[#allocation10 + $0x104] ss:$16 sps:$4 sm:$0xff]  }
  0x99   :  { %2217 = vmatpush1.bf16.msra.mxu1 %v3715_v37  ;;  %v3756_v18 = vld [vmem:[#allocation10 + $0x3c4] ss:$16 sps:$4 sm:$0xff]   ;;  %v3751_v19 = vld [vmem:[#allocation10 + $0x100] ss:$16 sps:$4 sm:$0xff]  }
  0x9a   :  { %2218 = vmatprep.subr.bf16.mxu1 %v3723_v38  ;;  %v3754_v20 = vld [vmem:[#allocation10 + $0x3c0] ss:$16 sps:$4 sm:$0xff]   ;;  %v3762_v22 = vld [vmem:[#allocation10 + $0x3e4] ss:$16 sps:$4 sm:$0xff]  }
  0x9b   :  { %v3757_v23 = vld [vmem:[#allocation10 + $0x120] ss:$16 sps:$4 sm:$0xff]   ;;  %v3765_v25 = vld [vmem:[#allocation10 + $0x144] ss:$16 sps:$4 sm:$0xff]  }
  0x9c   :  { %v3760_v24 = vld [vmem:[#allocation10 + $0x3e0] ss:$16 sps:$4 sm:$0xff]   ;;  %v3768_v26 = vld [vmem:[#allocation10 + $0x404] ss:$16 sps:$4 sm:$0xff]  }
  0x9d   :  { %2219 = vmatpush1.bf16.msra.mxu1 %v3721_v41  ;;  %3257 = vmatmul.mubr.msk.bf16.vlgmr.msra.gmra.mrb[12].mxu0 %vm171_vm1, %v138_v16  ;;  %v3750_v16 = vld [vmem:[#allocation10 + $0x3a4] ss:$16 sps:$4 sm:$0xff]   ;;  %v3763_v28 = vld [vmem:[#allocation10 + $0x140] ss:$16 sps:$4 sm:$0xff]  }
  0x9e   :  { %2220 = vmatprep.subr.bf16.mxu1 %v3729_v42  ;;  %409 = vmatpush1.bf16.msra.mxu0 %v3258_v43  ;;  %v3769_v29 = vld [vmem:[#allocation10 + $0x160] ss:$16 sps:$4 sm:$0xff]   ;;  %v3771_v30 = vld [vmem:[#allocation10 + $0x164] ss:$16 sps:$4 sm:$0xff]  }
  0x9f   :  { %440 = vmatprep.mubr.bf16.mxu0 %v4358_v0  ;;  %490 = vmatprep.subr.bf16.mxu0 %v3263_v45  ;;  %v4548_v32 = vld [vmem:[%s4674_s4] sm:$0xff]  ;;  %v592_v45 = vsub.s32 4, %v4543_v31 }
  0xa0   :  { %v4553_v35 = vrot.slane %v4548_v32, %v600_v33  ;;  %v3777_v36 = vld [vmem:[#allocation10 + $0x184] ss:$16 sps:$4 sm:$0xff]   ;;  %v4556_v37 = vrot.slane %v4548_v32, %v604_v34  ;;  %v3775_v38 = vld [vmem:[#allocation10 + $0x180] ss:$16 sps:$4 sm:$0xff]   ;;  %v4586_v33 = vsub.s32 0, %v4543_v31 }
  0xa1   :  { %2221 = vmatpush1.bf16.msra.mxu1 %v3727_v44  ;;  %v3783_v39 = vld [vmem:[#allocation10 + $0x1a4] ss:$16 sps:$4 sm:$0xff]   ;;  %v3781_v40 = vld [vmem:[#allocation10 + $0x1a0] ss:$16 sps:$4 sm:$0xff]  }
  0xa2   :  { %2222 = vmatprep.subr.bf16.mxu1 %v3735_v46  ;;  %v3789_v41 = vld [vmem:[#allocation10 + $0x1c4] ss:$16 sps:$4 sm:$0xff]   ;;  %v3787_v42 = vld [vmem:[#allocation10 + $0x1c0] ss:$16 sps:$4 sm:$0xff]   ;;  %v4560_v46 = vrot.slane %v4548_v32, %v592_v45 }
  0xa3   :  { %v3795_v43 = vld [vmem:[#allocation10 + $0x1e4] ss:$16 sps:$4 sm:$0xff]   ;;  %v3793_v44 = vld [vmem:[#allocation10 + $0x1e0] ss:$16 sps:$4 sm:$0xff]  }
  0xa5   :  { %2223 = vmatpush1.bf16.msra.mxu1 %v3733_v47  ;;  %3266 = vmatmul.mubr.msk.bf16.vlgmr.msra.gmra.mrb[16].mxu0 %vm404_vm2, %v4519_v21  ;;  %v3804_v47 = vld [vmem:[#allocation10 + $0xc] ss:$16 sps:$4 sm:$0xff]  }
  0xa6   :  { %491 = vmatpush1.bf16.msra.mxu0 %v3262_v49  ;;  %522 = vmatprep.mubr.bf16.mxu0 %v4358_v0  ;;  %v3712_v0 = vld [vmem:[#allocation10 + $0x2e0] ss:$16 sps:$4 sm:$0xff]  }
  0xa7   :  { %2253 = vmatprep.subr.bf16.mxu0 %v3687_v48  ;;  %2224 = vmatprep.subr.bf16.mxu1 %v3741_v9 }
  0xa9   :  { %2225 = vmatpush1.bf16.msra.mxu1 %v3739_v11 }
  0xaa   :  { %2226 = vmatprep.subr.bf16.mxu1 %v3747_v14 }
  0xad   :  { %3268 = vmatmul.mubr.msk.bf16.vlgmr.msra.gmra.mrb[20].mxu0 %vm404_vm2, %v4519_v21  ;;  %2227 = vmatpush1.bf16.msra.mxu1 %v3745_v13  ;;  %v3759_v21 = vld [vmem:[#allocation10 + $0x124] ss:$16 sps:$4 sm:$0xff]   ;;  %vm3232_vm2 = vcmask 7168  }
  0xae   :  { %2254 = vmatpush1.bf16.msra.mxu0 %v3685_v50  ;;  %2228 = vmatprep.subr.bf16.mxu1 %v3753_v17 }
  0xaf   :  { %2255 = vmatprep.subr.bf16.mxu0 %v3690_v51 }
  0xb1   :  { %2229 = vmatpush1.bf16.msra.mxu1 %v3751_v19 }
  0xb2   :  { %2256 = vmatpush1.bf16.msra.mxu0 %v3688_v52  ;;  %2230 = vmatprep.subr.bf16.mxu1 %v3759_v21  ;;  %v3780_v21 = vld [vmem:[#allocation10 + $0x444] ss:$16 sps:$4 sm:$0xff]  }
  0xb3   :  { %2257 = vmatprep.subr.bf16.mxu0 %v3693_v53  ;;  %v584_v53 = vsub.s32 2, %v4543_v31 }
  0xb5   :  { %2231 = vmatpush1.bf16.msra.mxu1 %v3757_v23 }
  0xb6   :  { %2258 = vmatpush1.bf16.msra.mxu0 %v3691_v54  ;;  %2232 = vmatprep.subr.bf16.mxu1 %v3765_v25  ;;  %v3778_v25 = vld [vmem:[#allocation10 + $0x440] ss:$16 sps:$4 sm:$0xff]  }
  0xb7   :  { %2259 = vmatprep.subr.bf16.mxu0 %v3696_v55  ;;  %v588_v55 = vsub.s32 3, %v4543_v31 }
  0xb9   :  { %2233 = vmatpush1.bf16.msra.mxu1 %v3763_v28  ;;  %v3786_v28 = vld [vmem:[#allocation10 + $0x464] ss:$16 sps:$4 sm:$0xff]  }
  0xba   :  { %2260 = vmatpush1.bf16.msra.mxu0 %v3694_v56  ;;  %2234 = vmatprep.subr.bf16.mxu1 %v3771_v30 }
  0xbb   :  { %2261 = vmatprep.subr.bf16.mxu0 %v3699_v57 }
  0xbd   :  { %2235 = vmatpush1.bf16.msra.mxu1 %v3769_v29 }
  0xbe   :  { %2262 = vmatpush1.bf16.msra.mxu0 %v3697_v58  ;;  %2236 = vmatprep.subr.bf16.mxu1 %v3777_v36  ;;  %v585_v58 = vrot.slane %v4548_v32, %v584_v53  ;;  %v4592_v36 = vsub.s32 1, %v4543_v31 }
  0xbf   :  { %2263 = vmatprep.subr.bf16.mxu0 %v3702_v59 }
  0xc1   :  { %2237 = vmatpush1.bf16.msra.mxu1 %v3775_v38  ;;  %v3784_v38 = vld [vmem:[#allocation10 + $0x460] ss:$16 sps:$4 sm:$0xff]  }
  0xc2   :  { %2264 = vmatpush1.bf16.msra.mxu0 %v3700_v60  ;;  %2238 = vmatprep.subr.bf16.mxu1 %v3783_v39  ;;  %v589_v60 = vrot.slane %v4548_v32, %v588_v55  ;;  %v3792_v39 = vld [vmem:[#allocation10 + $0x484] ss:$16 sps:$4 sm:$0xff]  }
  0xc3   :  { %2265 = vmatprep.subr.bf16.mxu0 %v3708_v61 }
  0xc5   :  { %2239 = vmatpush1.bf16.msra.mxu1 %v3781_v40  ;;  %v577_v40 = vrot.slane %v4548_v32, %v4586_v33 }
  0xc6   :  { %2266 = vmatpush1.bf16.msra.mxu0 %v3706_v62  ;;  %2240 = vmatprep.subr.bf16.mxu1 %v3789_v41 }
  0xc7   :  { %2267 = vmatprep.subr.bf16.mxu0 %v3714_v63 }
  0xc9   :  { %2241 = vmatpush1.bf16.msra.mxu1 %v3787_v42 }
  0xca   :  { %2268 = vmatpush1.bf16.msra.mxu0 %v3712_v0  ;;  %2242 = vmatprep.subr.bf16.mxu1 %v3795_v43 }
  0xcb   :  { %2269 = vmatprep.subr.bf16.mxu0 %v3720_v1 }
  0xcd   :  { %2243 = vmatpush1.bf16.msra.mxu1 %v3793_v44 }
  0xce   :  { %2270 = vmatpush1.bf16.msra.mxu0 %v3718_v2  ;;  %2376 = vmatprep.subr.bf16.mxu1 %v3804_v47  ;;  %v3798_v47 = vld [vmem:[#allocation10 + $0x4a4] ss:$16 sps:$4 sm:$0xff]  }
  0xcf   :  { %2271 = vmatprep.subr.bf16.mxu0 %v3726_v3 }
  0xd2   :  { %2272 = vmatpush1.bf16.msra.mxu0 %v3724_v4 }
  0xd3   :  { %2273 = vmatprep.subr.bf16.mxu0 %v3732_v5 }
  0xd6   :  { %2274 = vmatpush1.bf16.msra.mxu0 %v3730_v6 }
  0xd7   :  { %2275 = vmatprep.subr.bf16.mxu0 %v3738_v7 }
  0xda   :  { %2276 = vmatpush1.bf16.msra.mxu0 %v3736_v8 }
  0xdb   :  { %2277 = vmatprep.subr.bf16.mxu0 %v3744_v10 }
  0xde   :  { %2278 = vmatpush1.bf16.msra.mxu0 %v3742_v12 }
  0xdf   :  { %2279 = vmatprep.subr.bf16.mxu0 %v3750_v16 }
  0xe2   :  { %2280 = vmatpush1.bf16.msra.mxu0 %v3748_v15  ;;  %v3766_v15 = vld [vmem:[#allocation10 + $0x400] ss:$16 sps:$4 sm:$0xff]  }
  0xe3   :  { %2281 = vmatprep.subr.bf16.mxu0 %v3756_v18  ;;  %v3774_v18 = vld [vmem:[#allocation10 + $0x424] ss:$16 sps:$4 sm:$0xff]  }
  0xe6   :  { %2282 = vmatpush1.bf16.msra.mxu0 %v3754_v20  ;;  %v3772_v20 = vld [vmem:[#allocation10 + $0x420] ss:$16 sps:$4 sm:$0xff]  }
  0xe7   :  { %2283 = vmatprep.subr.bf16.mxu0 %v3762_v22 }
  0xea   :  { %2284 = vmatpush1.bf16.msra.mxu0 %v3760_v24 }
  0xeb   :  { %2294 = vmatprep.subr.bf16.mxu0 %v3768_v26 }
 0x158   :  { %v4562_v48 = vpop.f32.mrb[0].mxu0 }
 0x159   :  { %v4564_v49 = vpop.f32.mrb[1].mxu0 }
 0x15a   :  { %v238_v50 = vpop.f32.mrb[2].mxu0 }
 0x15b   :  { %v483_v51 = vpop.f32.mrb[0].mxu1  ;;  %v239_v52 = vpop.f32.mrb[3].mxu0 }
 0x15c   :  { %v485_v54 = vpop.f32.mrb[1].mxu1 }
 0x15d   :  { %v487_v56 = vpop.f32.mrb[2].mxu1 }
 0x15e   :  { %v488_v57 = vpop.f32.mrb[3].mxu1 }
 0x15f   :  { %v3796_v57 = vld [vmem:[#allocation10 + $0x4a0] ss:$16 sps:$4 sm:$0xff]  }
 0x160   :  { %v275_v59 = vpop.f32.mrb[4].mxu0 }
 0x161   :  { %v484_v61 = vadd.f32 %v483_v51, %v275_v59  ;;  %v277_v62 = vpop.f32.mrb[5].mxu0 }
 0x162   :  { %v486_v63 = vadd.f32 %v485_v54, %v277_v62  ;;  %v279_v0 = vpop.f32.mrb[6].mxu0  ;;  %v596_v54 = vsub.s32 5, %v4543_v31  ;;  %v4178_v31 = vld [vmem:[#allocation13 + $0x30] sm:$0xff]  }
 0x163   :  { %v565_v1 = vpop.f32.mrb[4].mxu1  ;;  %v616_v2 = vadd.f32 %v585_v58, %v484_v61  ;;  %v280_v3 = vpop.f32.mrb[7].mxu0 }
 0x164   :  { %v567_v4 = vpop.f32.mrb[5].mxu1  ;;  %v617_v5 = vadd.f32 %v589_v60, %v486_v63 }
 0x165   :  { %v569_v6 = vpop.f32.mrb[6].mxu1  ;;  %vm624_vm3 = vcmp.gt.f32.partialorder %v616_v2, 0.0  ;;  %v632_v7 = vmul.f32 0.01, %v616_v2 }
 0x166   :  { %v570_v8 = vpop.f32.mrb[7].mxu1  ;;  %v633_v9 = vmul.f32 0.01, %v617_v5  ;;  %vm625_vm4 = vcmp.gt.f32.partialorder %v617_v5, 0.0 }
 0x167   :  { %v640_v10 = vsel %vm624_vm3, %v616_v2, %v632_v7  ;;  %v3802_v2 = vld [vmem:[#allocation10 + $0x8] ss:$16 sps:$4 sm:$0xff]   ;;  %v3810_v8 = vld [vmem:[#allocation10 + $0x2c] ss:$16 sps:$4 sm:$0xff]  }
 0x168   :  { %v316_v11 = vpop.f32.mrb[8].mxu0  ;;  %v641_v12 = vsel %vm625_vm4, %v617_v5, %v633_v9  ;;  %v4578_v16 = vpack.c.bf16 %v640_v10, %v640_v10  ;;  %v3807_v5 = vld [vmem:[#allocation10 + $0x4e4] ss:$16 sps:$4 sm:$0xff]   ;;  %v3805_v10 = vld [vmem:[#allocation10 + $0x4e0] ss:$16 sps:$4 sm:$0xff]  }
 0x169   :  { %v4574_v13 = vpop.f32.mrb[9].mxu0  ;;  %v4576_v14 = vpack.c.bf16 %v641_v12, %v641_v12  ;;  %v3813_v12 = vld [vmem:[#allocation10 + $0x504] ss:$16 sps:$4 sm:$0xff]  }
 0x16a   :  { %v320_v17 = vpop.f32.mrb[10].mxu0 }
 0x16b   :  { %v321_v19 = vpop.f32.mrb[11].mxu0  ;;  %2285 = vmatprep.mubr.bf16.mxu0 %v4576_v14 }
 0x16c   :  { %2286 = vmatmul.mubr.bf16.vlgmr.msra.gmra.mrb[24].mxu0 %v4578_v16  ;;  %v3814_v19 = vld [vmem:[#allocation10 + $0x48] ss:$16 sps:$4 sm:$0xff]  }
 0x16d   :  { %2295 = vmatpush1.bf16.msra.mxu0 %v3766_v15 }
 0x16e   :  { %2296 = vmatprep.subr.bf16.mxu0 %v3774_v18 }
 0x170   :  { %v357_v22 = vpop.f32.mrb[12].mxu0 }
 0x171   :  { %v566_v23 = vadd.f32 %v565_v1, %v357_v22  ;;  %2297 = vmatpush1.bf16.msra.mxu0 %v3772_v20  ;;  %v359_v24 = vpop.f32.mrb[13].mxu0  ;;  %v3799_v1 = vld [vmem:[#allocation10 + $0x4c0] ss:$16 sps:$4 sm:$0xff]   ;;  %v3819_v20 = vld [vmem:[#allocation10 + $0x524] ss:$16 sps:$4 sm:$0xff]  }
 0x172   :  { %v568_v26 = vadd.f32 %v567_v4, %v359_v24  ;;  %v361_v27 = vpop.f32.mrb[14].mxu0  ;;  %2298 = vmatprep.subr.bf16.mxu0 %v3780_v21  ;;  %v3822_v21 = vld [vmem:[#allocation10 + $0x6c] ss:$16 sps:$4 sm:$0xff]   ;;  %v3817_v22 = vld [vmem:[#allocation10 + $0x520] ss:$16 sps:$4 sm:$0xff]  }
 0x173   :  { %v4583_v29 = vadd.f32 %v4553_v35, %v566_v23  ;;  %v362_v30 = vpop.f32.mrb[15].mxu0  ;;  %v581_v35 = vrot.slane %v4548_v32, %v4592_v36  ;;  %v3820_v23 = vld [vmem:[#allocation10 + $0x68] ss:$16 sps:$4 sm:$0xff]   ;;  %v3825_v24 = vld [vmem:[#allocation10 + $0x544] ss:$16 sps:$4 sm:$0xff]  }
 0x174   :  { %v4589_v34 = vadd.f32 %v4556_v37, %v568_v26  ;;  %v3790_v37 = vld [vmem:[#allocation10 + $0x480] ss:$16 sps:$4 sm:$0xff]   ;;  %v3826_v27 = vld [vmem:[#allocation10 + $0x88] ss:$16 sps:$4 sm:$0xff]   ;;  %v3834_v30 = vld [vmem:[#allocation10 + $0xac] ss:$16 sps:$4 sm:$0xff]  }
 0x175   :  { %2299 = vmatpush1.bf16.msra.mxu0 %v3778_v25  ;;  %v3828_v25 = vld [vmem:[#allocation10 + $0x8c] ss:$16 sps:$4 sm:$0xff]   ;;  %v3823_v26 = vld [vmem:[#allocation10 + $0x540] ss:$16 sps:$4 sm:$0xff]   ;;  %vm628_vm10 = vcmp.gt.f32.partialorder %v4583_v29, 0.0 }
 0x176   :  { %2300 = vmatprep.subr.bf16.mxu0 %v3786_v28  ;;  %v3831_v28 = vld [vmem:[#allocation10 + $0x564] ss:$16 sps:$4 sm:$0xff]   ;;  %vm629_vm9 = vcmp.gt.f32.partialorder %v4589_v34, 0.0 }
 0x178   :  { %v442_v41 = vpop.f32.mrb[16].mxu0 }
 0x179   :  { %v443_v42 = vadd.f32 %v442_v41, %v4562_v48  ;;  %2301 = vmatpush1.bf16.msra.mxu0 %v3784_v38  ;;  %v444_v43 = vpop.f32.mrb[17].mxu0  ;;  %v3801_v48 = vld [vmem:[#allocation10 + $0x4c4] ss:$16 sps:$4 sm:$0xff]   ;;  %v3829_v38 = vld [vmem:[#allocation10 + $0x560] ss:$16 sps:$4 sm:$0xff]  }
 0x17a   :  { %v445_v44 = vadd.f32 %v444_v43, %v4564_v49  ;;  %v446_v45 = vpop.f32.mrb[18].mxu0  ;;  %2302 = vmatprep.subr.bf16.mxu0 %v3792_v39  ;;  %v597_v49 = vrot.slane %v4548_v32, %v596_v54  ;;  %v3832_v39 = vld [vmem:[#allocation10 + $0xa8] ss:$16 sps:$4 sm:$0xff]   ;;  %v3840_v41 = vld [vmem:[#allocation10 + $0xcc] ss:$16 sps:$4 sm:$0xff]  }
 0x17b   :  { %v614_v50 = vadd.f32 %v577_v40, %v443_v42  ;;  %v447_v51 = vpop.f32.mrb[19].mxu0  ;;  %v3837_v40 = vld [vmem:[#allocation10 + $0x584] ss:$16 sps:$4 sm:$0xff]   ;;  %v3838_v42 = vld [vmem:[#allocation10 + $0xc8] ss:$16 sps:$4 sm:$0xff]  }
 0x17c   :  { %v615_v52 = vadd.f32 %v581_v35, %v445_v44  ;;  %v3835_v35 = vld [vmem:[#allocation10 + $0x580] ss:$16 sps:$4 sm:$0xff]   ;;  %v3843_v43 = vld [vmem:[#allocation10 + $0x5a4] ss:$16 sps:$4 sm:$0xff]   ;;  %v3844_v45 = vld [vmem:[#allocation10 + $0xe8] ss:$16 sps:$4 sm:$0xff]  }
 0x17d   :  { %vm622_vm5 = vcmp.gt.f32.partialorder %v614_v50, 0.0  ;;  %v630_v56 = vmul.f32 0.01, %v614_v50  ;;  %2303 = vmatpush1.bf16.msra.mxu0 %v3790_v37  ;;  %v3846_v37 = vld [vmem:[#allocation10 + $0xec] ss:$16 sps:$4 sm:$0xff]  }
 0x17e   :  { %v631_v58 = vmul.f32 0.01, %v615_v52  ;;  %2304 = vmatprep.subr.bf16.mxu0 %v3798_v47  ;;  %vm623_vm6 = vcmp.gt.f32.partialorder %v615_v52, 0.0  ;;  %v3841_v44 = vld [vmem:[#allocation10 + $0x5a0] ss:$16 sps:$4 sm:$0xff]  }
 0x17f   :  { %v638_v59 = vsel %vm622_vm5, %v614_v50, %v630_v56  ;;  %v3849_v47 = vld [vmem:[#allocation10 + $0x5c4] ss:$16 sps:$4 sm:$0xff]   ;;  %v3852_v50 = vld [vmem:[#allocation10 + $0x10c] ss:$16 sps:$4 sm:$0xff]   ;;  %v3847_v51 = vld [vmem:[#allocation10 + $0x5c0] ss:$16 sps:$4 sm:$0xff]  }
 0x180   :  { %v524_v60 = vpop.f32.mrb[20].mxu0  ;;  %v639_v61 = vsel %vm623_vm6, %v615_v52, %v631_v58  ;;  %v4602_v3 = vpack.c.bf16 %v638_v59, %v638_v59  ;;  %v3850_v52 = vld [vmem:[#allocation10 + $0x108] ss:$16 sps:$4 sm:$0xff]   ;;  %v3855_v54 = vld [vmem:[#allocation10 + $0x5e4] ss:$16 sps:$4 sm:$0xff]  }
 0x181   :  { %v525_v62 = vadd.f32 %v524_v60, %v316_v11  ;;  %2305 = vmatpush1.bf16.msra.mxu0 %v3796_v57  ;;  %v526_v63 = vpop.f32.mrb[21].mxu0  ;;  %v647_v0 = vpack.c.bf16 %v639_v61, %v639_v61  ;;  %v3808_v11 = vld [vmem:[#allocation10 + $0x28] ss:$16 sps:$4 sm:$0xff]   ;;  %v3858_v56 = vld [vmem:[#allocation10 + $0x12c] ss:$16 sps:$4 sm:$0xff]  }
 0x182   :  { %v527_v4 = vadd.f32 %v526_v63, %v4574_v13  ;;  %2306 = vmatprep.subr.bf16.mxu0 %v3801_v48  ;;  %v528_v6 = vpop.f32.mrb[22].mxu0  ;;  %v3816_v13 = vld [vmem:[#allocation10 + $0x4c] ss:$16 sps:$4 sm:$0xff]   ;;  %v637_v58 = vmul.f32 0.01, %v4589_v34 }
 0x183   :  { %v4606_v7 = vadd.f32 %v4560_v46, %v525_v62  ;;  %2244 = vmatprep.mubr.bf16.mxu1 %v647_v0  ;;  %v529_v32 = vpop.f32.mrb[23].mxu0  ;;  %v3811_v46 = vld [vmem:[#allocation10 + $0x500] ss:$16 sps:$4 sm:$0xff]   ;;  %v3856_v59 = vld [vmem:[#allocation10 + $0x128] ss:$16 sps:$4 sm:$0xff]  }
 0x184   :  { %v619_v9 = vadd.f32 %v597_v49, %v527_v4  ;;  %2245 = vmatmul.mubr.bf16.vlgmr.msra.gmra.mrb[8].mxu1 %v4602_v3  ;;  %v3853_v48 = vld [vmem:[#allocation10 + $0x5e0] ss:$16 sps:$4 sm:$0xff]   ;;  %v3861_v60 = vld [vmem:[#allocation10 + $0x604] ss:$16 sps:$4 sm:$0xff]   ;;  %v3864_v49 = vld [vmem:[#allocation10 + $0x14c] ss:$16 sps:$4 sm:$0xff]   ;;  %v645_v62 = vsel %vm629_vm9, %v4589_v34, %v637_v58 }
 0x185   :  { %2307 = vmatpush1.bf16.msra.mxu0 %v3799_v1  ;;  %2377 = vmatpush1.bf16.msra.mxu1 %v3802_v2  ;;  %v634_v57 = vmul.f32 0.01, %v4606_v7  ;;  %vm626_vm8 = vcmp.gt.f32.partialorder %v4606_v7, 0.0  ;;  %v3859_v63 = vld [vmem:[#allocation10 + $0x600] ss:$16 sps:$4 sm:$0xff]   ;;  %v4620_v4 = vpack.c.bf16 %v645_v62, %v645_v62 }
 0x186   :  { %v635_v15 = vmul.f32 0.01, %v619_v9  ;;  %2408 = vmatprep.mubr.bf16.mxu1 %v647_v0  ;;  %2308 = vmatprep.subr.bf16.mxu0 %v3807_v5  ;;  %vm627_vm7 = vcmp.gt.f32.partialorder %v619_v9, 0.0  ;;  %v3862_v1 = vld [vmem:[#allocation10 + $0x148] ss:$16 sps:$4 sm:$0xff]  }
 0x187   :  { %2378 = vmatprep.subr.bf16.mxu1 %v3810_v8  ;;  %v642_v61 = vsel %vm626_vm8, %v4606_v7, %v634_v57  ;;  %v3867_v2 = vld [vmem:[#allocation10 + $0x624] ss:$16 sps:$4 sm:$0xff]   ;;  %v3870_v5 = vld [vmem:[#allocation10 + $0x16c] ss:$16 sps:$4 sm:$0xff]   ;;  %v3865_v6 = vld [vmem:[#allocation10 + $0x620] ss:$16 sps:$4 sm:$0xff]  }
 0x188   :  { %v643_v17 = vsel %vm627_vm7, %v619_v9, %v635_v15  ;;  %v4618_v0 = vpack.c.bf16 %v642_v61, %v642_v61  ;;  %v3868_v34 = vld [vmem:[#allocation10 + $0x168] ss:$16 sps:$4 sm:$0xff]   ;;  %v3873_v7 = vld [vmem:[#allocation10 + $0x644] ss:$16 sps:$4 sm:$0xff]   ;;  %v3876_v8 = vld [vmem:[#allocation10 + $0x18c] ss:$16 sps:$4 sm:$0xff]  }
 0x189   :  { %2309 = vmatpush1.bf16.msra.mxu0 %v3805_v10  ;;  %2379 = vmatpush1.bf16.msra.mxu1 %v3808_v11  ;;  %v4609_v18 = vpack.c.bf16 %v643_v17, %v643_v17  ;;  %v3871_v32 = vld [vmem:[#allocation10 + $0x640] ss:$16 sps:$4 sm:$0xff]   ;;  %v3874_v9 = vld [vmem:[#allocation10 + $0x188] ss:$16 sps:$4 sm:$0xff]   ;;  %v3879_v10 = vld [vmem:[#allocation10 + $0x664] ss:$16 sps:$4 sm:$0xff]  }
 0x18a   :  { %2310 = vmatprep.subr.bf16.mxu0 %v3813_v12  ;;  %2380 = vmatprep.subr.bf16.mxu1 %v3816_v13  ;;  %v3882_v11 = vld [vmem:[#allocation10 + $0x1ac] ss:$16 sps:$4 sm:$0xff]   ;;  %v3877_v12 = vld [vmem:[#allocation10 + $0x660] ss:$16 sps:$4 sm:$0xff]   ;;  %v3880_v15 = vld [vmem:[#allocation10 + $0x1a8] ss:$16 sps:$4 sm:$0xff]  }
 0x18b   :  { %2326 = vmatprep.mubr.bf16.mxu0 %v4609_v18  ;;  %v3885_v13 = vld [vmem:[#allocation10 + $0x684] ss:$16 sps:$4 sm:$0xff]   ;;  %v3888_v17 = vld [vmem:[#allocation10 + $0x1cc] ss:$16 sps:$4 sm:$0xff]   ;;  %v3937_v61 = vld [vmem:[#allocation10 + $0x7a0] ss:$16 sps:$4 sm:$0xff]  }
 0x18c   :  { %v3933_v57 = vld [vmem:[#allocation10 + $0x784] ss:$16 sps:$4 sm:$0xff]   ;;  %v3936_v58 = vld [vmem:[#allocation10 + $0x2cc] ss:$16 sps:$4 sm:$0xff]   ;;  %v3940_v62 = vld [vmem:[#allocation10 + $0x2e8] ss:$16 sps:$4 sm:$0xff]  }
 0x18d   :  { %2311 = vmatpush1.bf16.msra.mxu0 %v3811_v46  ;;  %2381 = vmatpush1.bf16.msra.mxu1 %v3814_v19  ;;  %v3883_v46 = vld [vmem:[#allocation10 + $0x680] ss:$16 sps:$4 sm:$0xff]   ;;  %v3886_v19 = vld [vmem:[#allocation10 + $0x1c8] ss:$16 sps:$4 sm:$0xff]  }
 0x18e   :  { %2312 = vmatprep.subr.bf16.mxu0 %v3819_v20  ;;  %2382 = vmatprep.subr.bf16.mxu1 %v3822_v21  ;;  %v3891_v20 = vld [vmem:[#allocation10 + $0x6a4] ss:$16 sps:$4 sm:$0xff]   ;;  %v3894_v21 = vld [vmem:[#allocation10 + $0x1ec] ss:$16 sps:$4 sm:$0xff]  }
 0x191   :  { %2313 = vmatpush1.bf16.msra.mxu0 %v3817_v22  ;;  %2383 = vmatpush1.bf16.msra.mxu1 %v3820_v23  ;;  %v3889_v22 = vld [vmem:[#allocation10 + $0x6a0] ss:$16 sps:$4 sm:$0xff]   ;;  %v3892_v23 = vld [vmem:[#allocation10 + $0x1e8] ss:$16 sps:$4 sm:$0xff]  }
 0x192   :  { %2314 = vmatprep.subr.bf16.mxu0 %v3825_v24  ;;  %2384 = vmatprep.subr.bf16.mxu1 %v3828_v25  ;;  %v3897_v24 = vld [vmem:[#allocation10 + $0x6c4] ss:$16 sps:$4 sm:$0xff]   ;;  %v3900_v25 = vld [vmem:[#allocation10 + $0x20c] ss:$16 sps:$4 sm:$0xff]  }
 0x195   :  { %2315 = vmatpush1.bf16.msra.mxu0 %v3823_v26  ;;  %2385 = vmatpush1.bf16.msra.mxu1 %v3826_v27  ;;  %v3895_v26 = vld [vmem:[#allocation10 + $0x6c0] ss:$16 sps:$4 sm:$0xff]   ;;  %v3898_v27 = vld [vmem:[#allocation10 + $0x208] ss:$16 sps:$4 sm:$0xff]  }
 0x196   :  { %2316 = vmatprep.subr.bf16.mxu0 %v3831_v28  ;;  %2386 = vmatprep.subr.bf16.mxu1 %v3834_v30  ;;  %v3903_v28 = vld [vmem:[#allocation10 + $0x6e4] ss:$16 sps:$4 sm:$0xff]   ;;  %v3906_v30 = vld [vmem:[#allocation10 + $0x22c] ss:$16 sps:$4 sm:$0xff]  }
 0x199   :  { %2317 = vmatpush1.bf16.msra.mxu0 %v3829_v38  ;;  %2387 = vmatpush1.bf16.msra.mxu1 %v3832_v39  ;;  %v3901_v38 = vld [vmem:[#allocation10 + $0x6e0] ss:$16 sps:$4 sm:$0xff]   ;;  %v3904_v39 = vld [vmem:[#allocation10 + $0x228] ss:$16 sps:$4 sm:$0xff]  }
 0x19a   :  { %2318 = vmatprep.subr.bf16.mxu0 %v3837_v40  ;;  %2388 = vmatprep.subr.bf16.mxu1 %v3840_v41  ;;  %v3909_v40 = vld [vmem:[#allocation10 + $0x704] ss:$16 sps:$4 sm:$0xff]   ;;  %v3912_v41 = vld [vmem:[#allocation10 + $0x24c] ss:$16 sps:$4 sm:$0xff]  }
 0x19d   :  { %2319 = vmatpush1.bf16.msra.mxu0 %v3835_v35  ;;  %2389 = vmatpush1.bf16.msra.mxu1 %v3838_v42  ;;  %v3907_v35 = vld [vmem:[#allocation10 + $0x700] ss:$16 sps:$4 sm:$0xff]   ;;  %v3910_v42 = vld [vmem:[#allocation10 + $0x248] ss:$16 sps:$4 sm:$0xff]  }
 0x19e   :  { %2320 = vmatprep.subr.bf16.mxu0 %v3843_v43  ;;  %2390 = vmatprep.subr.bf16.mxu1 %v3846_v37  ;;  %v3915_v43 = vld [vmem:[#allocation10 + $0x724] ss:$16 sps:$4 sm:$0xff]   ;;  %v3918_v37 = vld [vmem:[#allocation10 + $0x26c] ss:$16 sps:$4 sm:$0xff]  }
 0x1a1   :  { %2321 = vmatpush1.bf16.msra.mxu0 %v3841_v44  ;;  %2391 = vmatpush1.bf16.msra.mxu1 %v3844_v45  ;;  %v3916_v44 = vld [vmem:[#allocation10 + $0x268] ss:$16 sps:$4 sm:$0xff]   ;;  %v3921_v45 = vld [vmem:[#allocation10 + $0x744] ss:$16 sps:$4 sm:$0xff]  }
 0x1a2   :  { %2322 = vmatprep.subr.bf16.mxu0 %v3849_v47  ;;  %2392 = vmatprep.subr.bf16.mxu1 %v3852_v50  ;;  %v3919_v47 = vld [vmem:[#allocation10 + $0x740] ss:$16 sps:$4 sm:$0xff]   ;;  %v3922_v50 = vld [vmem:[#allocation10 + $0x288] ss:$16 sps:$4 sm:$0xff]  }
 0x1a5   :  { %2323 = vmatpush1.bf16.msra.mxu0 %v3847_v51  ;;  %2393 = vmatpush1.bf16.msra.mxu1 %v3850_v52  ;;  %v3927_v51 = vld [vmem:[#allocation10 + $0x764] ss:$16 sps:$4 sm:$0xff]   ;;  %v3930_v52 = vld [vmem:[#allocation10 + $0x2ac] ss:$16 sps:$4 sm:$0xff]  }
 0x1a6   :  { %2324 = vmatprep.subr.bf16.mxu0 %v3855_v54  ;;  %2394 = vmatprep.subr.bf16.mxu1 %v3858_v56  ;;  %v3925_v54 = vld [vmem:[#allocation10 + $0x760] ss:$16 sps:$4 sm:$0xff]   ;;  %v3928_v56 = vld [vmem:[#allocation10 + $0x2a8] ss:$16 sps:$4 sm:$0xff]  }
 0x1a9   :  { %2325 = vmatpush1.bf16.msra.mxu0 %v3853_v48  ;;  %2395 = vmatpush1.bf16.msra.mxu1 %v3856_v59  ;;  %v3931_v48 = vld [vmem:[#allocation10 + $0x780] ss:$16 sps:$4 sm:$0xff]   ;;  %v3934_v59 = vld [vmem:[#allocation10 + $0x2c8] ss:$16 sps:$4 sm:$0xff]  }
 0x1aa   :  { %2335 = vmatprep.subr.bf16.mxu0 %v3861_v60  ;;  %2396 = vmatprep.subr.bf16.mxu1 %v3864_v49  ;;  %v3939_v60 = vld [vmem:[#allocation10 + $0x7a4] ss:$16 sps:$4 sm:$0xff]   ;;  %v3942_v49 = vld [vmem:[#allocation10 + $0x2ec] ss:$16 sps:$4 sm:$0xff]  }
 0x1ac   :  { %2327 = vmatmul.mubr.bf16.vlgmr.msra.gmra.mrb[24].mxu0 %v4618_v0 }
 0x1ad   :  { %2336 = vmatpush1.bf16.msra.mxu0 %v3859_v63  ;;  %2367 = vmatprep.mubr.bf16.mxu0 %v4620_v4  ;;  %v3945_v63 = vld [vmem:[#allocation10 + $0x7c4] ss:$16 sps:$4 sm:$0xff]  }
 0x1ae   :  { %2397 = vmatpush1.bf16.msra.mxu1 %v3862_v1  ;;  %2337 = vmatprep.subr.bf16.mxu0 %v3867_v2  ;;  %v3948_v1 = vld [vmem:[#allocation10 + $0x30c] ss:$16 sps:$4 sm:$0xff]   ;;  %v3943_v2 = vld [vmem:[#allocation10 + $0x7c0] ss:$16 sps:$4 sm:$0xff]  }
 0x1af   :  { %2398 = vmatprep.subr.bf16.mxu1 %v3870_v5  ;;  %v3946_v5 = vld [vmem:[#allocation10 + $0x308] ss:$16 sps:$4 sm:$0xff]  }
 0x1b1   :  { %2338 = vmatpush1.bf16.msra.mxu0 %v3865_v6  ;;  %v3951_v6 = vld [vmem:[#allocation10 + $0x7e4] ss:$16 sps:$4 sm:$0xff]  }
 0x1b2   :  { %2399 = vmatpush1.bf16.msra.mxu1 %v3868_v34  ;;  %2339 = vmatprep.subr.bf16.mxu0 %v3873_v7  ;;  %v636_v34 = vmul.f32 0.01, %v4583_v29  ;;  %v3954_v7 = vld [vmem:[#allocation10 + $0x32c] ss:$16 sps:$4 sm:$0xff]  }
 0x1b3   :  { %2400 = vmatprep.subr.bf16.mxu1 %v3876_v8  ;;  %v3949_v8 = vld [vmem:[#allocation10 + $0x7e0] ss:$16 sps:$4 sm:$0xff]  }
 0x1b5   :  { %2340 = vmatpush1.bf16.msra.mxu0 %v3871_v32  ;;  %v3952_v32 = vld [vmem:[#allocation10 + $0x328] ss:$16 sps:$4 sm:$0xff]  }
 0x1b6   :  { %2401 = vmatpush1.bf16.msra.mxu1 %v3874_v9  ;;  %2341 = vmatprep.subr.bf16.mxu0 %v3879_v10  ;;  %v644_v9 = vsel %vm628_vm10, %v4583_v29, %v636_v34  ;;  %v3957_v10 = vld [vmem:[#allocation10 + $0x34c] ss:$16 sps:$4 sm:$0xff]   ;;  %v3964_v29 = vld [vmem:[#allocation10 + $0x3a8] ss:$16 sps:$4 sm:$0xff]  }
 0x1b7   :  { %2402 = vmatprep.subr.bf16.mxu1 %v3882_v11  ;;  %v4629_v11 = vpack.c.bf16 %v644_v9, %v644_v9  ;;  %v4005_v34 = vld [vmem:[#allocation10 + $0x54c] ss:$16 sps:$4 sm:$0xff]  }
 0x1b8   :  { %v4008_v9 = vld [vmem:[#allocation10 + $0x56c] ss:$16 sps:$4 sm:$0xff]  }
 0x1b9   :  { %2342 = vmatpush1.bf16.msra.mxu0 %v3877_v12  ;;  %v3955_v12 = vld [vmem:[#allocation10 + $0x348] ss:$16 sps:$4 sm:$0xff]  }
 0x1ba   :  { %2403 = vmatpush1.bf16.msra.mxu1 %v3880_v15  ;;  %2343 = vmatprep.subr.bf16.mxu0 %v3885_v13  ;;  %v3960_v15 = vld [vmem:[#allocation10 + $0x36c] ss:$16 sps:$4 sm:$0xff]   ;;  %v3958_v13 = vld [vmem:[#allocation10 + $0x368] ss:$16 sps:$4 sm:$0xff]  }
 0x1bb   :  { %2404 = vmatprep.subr.bf16.mxu1 %v3888_v17  ;;  %v3963_v17 = vld [vmem:[#allocation10 + $0x38c] ss:$16 sps:$4 sm:$0xff]  }
 0x1bd   :  { %2344 = vmatpush1.bf16.msra.mxu0 %v3883_v46  ;;  %v3961_v46 = vld [vmem:[#allocation10 + $0x388] ss:$16 sps:$4 sm:$0xff]  }
 0x1be   :  { %2405 = vmatpush1.bf16.msra.mxu1 %v3886_v19  ;;  %2345 = vmatprep.subr.bf16.mxu0 %v3891_v20  ;;  %v3966_v19 = vld [vmem:[#allocation10 + $0x3ac] ss:$16 sps:$4 sm:$0xff]  }
 0x1bf   :  { %2406 = vmatprep.subr.bf16.mxu1 %v3894_v21  ;;  %v3969_v20 = vld [vmem:[#allocation10 + $0x3cc] ss:$16 sps:$4 sm:$0xff]   ;;  %v3967_v21 = vld [vmem:[#allocation10 + $0x3c8] ss:$16 sps:$4 sm:$0xff]  }
 0x1c1   :  { %2346 = vmatpush1.bf16.msra.mxu0 %v3889_v22  ;;  %v3972_v22 = vld [vmem:[#allocation10 + $0x3ec] ss:$16 sps:$4 sm:$0xff]  }
 0x1c2   :  { %2407 = vmatpush1.bf16.msra.mxu1 %v3892_v23  ;;  %2347 = vmatprep.subr.bf16.mxu0 %v3897_v24  ;;  %v3970_v23 = vld [vmem:[#allocation10 + $0x3e8] ss:$16 sps:$4 sm:$0xff]   ;;  %v3975_v24 = vld [vmem:[#allocation10 + $0x40c] ss:$16 sps:$4 sm:$0xff]  }
 0x1c3   :  { %2417 = vmatprep.subr.bf16.mxu1 %v3900_v25  ;;  %v3973_v25 = vld [vmem:[#allocation10 + $0x408] ss:$16 sps:$4 sm:$0xff]  }
 0x1c5   :  { %2409 = vmatmul.mubr.bf16.vlgmr.msra.gmra.mrb[12].mxu1 %v4602_v3  ;;  %2348 = vmatpush1.bf16.msra.mxu0 %v3895_v26  ;;  %v3913_v3 = vld [vmem:[#allocation10 + $0x720] ss:$16 sps:$4 sm:$0xff]   ;;  %v3978_v26 = vld [vmem:[#allocation10 + $0x42c] ss:$16 sps:$4 sm:$0xff]  }
 0x1c6   :  { %2418 = vmatpush1.bf16.msra.mxu1 %v3898_v27  ;;  %2449 = vmatprep.mubr.bf16.mxu1 %v4576_v14  ;;  %v3924_v14 = vld [vmem:[#allocation10 + $0x28c] ss:$16 sps:$4 sm:$0xff]   ;;  %v4069_v27 = vld [vmem:[#allocation11] ss:$8 sps:$4 sm:$0xff]  }
 0x1c7   :  { %2349 = vmatprep.subr.bf16.mxu0 %v3903_v28  ;;  %2419 = vmatprep.subr.bf16.mxu1 %v3906_v30  ;;  %v4071_v28 = vld [vmem:[#allocation11 + $0x4] ss:$8 sps:$4 sm:$0xff]   ;;  %v3976_v30 = vld [vmem:[#allocation10 + $0x428] ss:$16 sps:$4 sm:$0xff]  }
 0x1c9   :  { %2350 = vmatpush1.bf16.msra.mxu0 %v3901_v38  ;;  %v4074_v38 = vld [vmem:[#allocation11 + $0x14] ss:$8 sps:$4 sm:$0xff]  }
 0x1ca   :  { %2420 = vmatpush1.bf16.msra.mxu1 %v3904_v39  ;;  %2351 = vmatprep.subr.bf16.mxu0 %v3909_v40  ;;  %v3981_v39 = vld [vmem:[#allocation10 + $0x44c] ss:$16 sps:$4 sm:$0xff]   ;;  %v4072_v40 = vld [vmem:[#allocation11 + $0x10] ss:$8 sps:$4 sm:$0xff]  }
 0x1cb   :  { %2421 = vmatprep.subr.bf16.mxu1 %v3912_v41  ;;  %v4077_v41 = vld [vmem:[#allocation11 + $0x24] ss:$8 sps:$4 sm:$0xff]  }
 0x1cd   :  { %2352 = vmatpush1.bf16.msra.mxu0 %v3907_v35  ;;  %v3979_v35 = vld [vmem:[#allocation10 + $0x448] ss:$16 sps:$4 sm:$0xff]  }
 0x1ce   :  { %2422 = vmatpush1.bf16.msra.mxu1 %v3910_v42  ;;  %2353 = vmatprep.subr.bf16.mxu0 %v3915_v43  ;;  %v3984_v42 = vld [vmem:[#allocation10 + $0x46c] ss:$16 sps:$4 sm:$0xff]  }
 0x1cf   :  { %2423 = vmatprep.subr.bf16.mxu1 %v3918_v37  ;;  %v4080_v43 = vld [vmem:[#allocation11 + $0x34] ss:$8 sps:$4 sm:$0xff]   ;;  %v3982_v37 = vld [vmem:[#allocation10 + $0x468] ss:$16 sps:$4 sm:$0xff]  }
 0x1d1   :  { %2354 = vmatpush1.bf16.msra.mxu0 %v3913_v3  ;;  %v4078_v3 = vld [vmem:[#allocation11 + $0x30] ss:$8 sps:$4 sm:$0xff]  }
 0x1d2   :  { %2424 = vmatpush1.bf16.msra.mxu1 %v3916_v44  ;;  %2355 = vmatprep.subr.bf16.mxu0 %v3921_v45  ;;  %v4083_v44 = vld [vmem:[#allocation11 + $0x44] ss:$8 sps:$4 sm:$0xff]   ;;  %v3985_v45 = vld [vmem:[#allocation10 + $0x488] ss:$16 sps:$4 sm:$0xff]  }
 0x1d3   :  { %2425 = vmatprep.subr.bf16.mxu1 %v3924_v14  ;;  %v3990_v14 = vld [vmem:[#allocation10 + $0x4ac] ss:$16 sps:$4 sm:$0xff]  }
 0x1d5   :  { %2356 = vmatpush1.bf16.msra.mxu0 %v3919_v47  ;;  %v4081_v47 = vld [vmem:[#allocation11 + $0x40] ss:$8 sps:$4 sm:$0xff]  }
 0x1d6   :  { %2426 = vmatpush1.bf16.msra.mxu1 %v3922_v50  ;;  %2357 = vmatprep.subr.bf16.mxu0 %v3927_v51  ;;  %v4086_v50 = vld [vmem:[#allocation11 + $0x54] ss:$8 sps:$4 sm:$0xff]   ;;  %v3988_v51 = vld [vmem:[#allocation10 + $0x4a8] ss:$16 sps:$4 sm:$0xff]  }
 0x1d7   :  { %2427 = vmatprep.subr.bf16.mxu1 %v3930_v52  ;;  %v3993_v52 = vld [vmem:[#allocation10 + $0x4cc] ss:$16 sps:$4 sm:$0xff]  }
 0x1d9   :  { %2358 = vmatpush1.bf16.msra.mxu0 %v3925_v54  ;;  %v4084_v54 = vld [vmem:[#allocation11 + $0x50] ss:$8 sps:$4 sm:$0xff]  }
 0x1da   :  { %2428 = vmatpush1.bf16.msra.mxu1 %v3928_v56  ;;  %2359 = vmatprep.subr.bf16.mxu0 %v3933_v57  ;;  %v4089_v56 = vld [vmem:[#allocation11 + $0x64] ss:$8 sps:$4 sm:$0xff]   ;;  %v3991_v57 = vld [vmem:[#allocation10 + $0x4c8] ss:$16 sps:$4 sm:$0xff]  }
 0x1db   :  { %2429 = vmatprep.subr.bf16.mxu1 %v3936_v58  ;;  %v3996_v58 = vld [vmem:[#allocation10 + $0x4ec] ss:$16 sps:$4 sm:$0xff]  }
 0x1dd   :  { %2360 = vmatpush1.bf16.msra.mxu0 %v3931_v48  ;;  %v4087_v48 = vld [vmem:[#allocation11 + $0x60] ss:$8 sps:$4 sm:$0xff]  }
 0x1de   :  { %2430 = vmatpush1.bf16.msra.mxu1 %v3934_v59  ;;  %2361 = vmatprep.subr.bf16.mxu0 %v3939_v60  ;;  %v4092_v59 = vld [vmem:[#allocation11 + $0x74] ss:$8 sps:$4 sm:$0xff]   ;;  %v3994_v60 = vld [vmem:[#allocation10 + $0x4e8] ss:$16 sps:$4 sm:$0xff]  }
 0x1df   :  { %2431 = vmatprep.subr.bf16.mxu1 %v3942_v49  ;;  %v3999_v49 = vld [vmem:[#allocation10 + $0x50c] ss:$16 sps:$4 sm:$0xff]  }
 0x1e1   :  { %2362 = vmatpush1.bf16.msra.mxu0 %v3937_v61  ;;  %v4090_v61 = vld [vmem:[#allocation11 + $0x70] ss:$8 sps:$4 sm:$0xff]  }
 0x1e2   :  { %2432 = vmatpush1.bf16.msra.mxu1 %v3940_v62  ;;  %2363 = vmatprep.subr.bf16.mxu0 %v3945_v63  ;;  %v4095_v62 = vld [vmem:[#allocation11 + $0x84] ss:$8 sps:$4 sm:$0xff]   ;;  %v3997_v63 = vld [vmem:[#allocation10 + $0x508] ss:$16 sps:$4 sm:$0xff]  }
 0x1e3   :  { %2433 = vmatprep.subr.bf16.mxu1 %v3948_v1  ;;  %v4002_v1 = vld [vmem:[#allocation10 + $0x52c] ss:$16 sps:$4 sm:$0xff]  }
 0x1e5   :  { %2364 = vmatpush1.bf16.msra.mxu0 %v3943_v2  ;;  %v4093_v2 = vld [vmem:[#allocation11 + $0x80] ss:$8 sps:$4 sm:$0xff]  }
 0x1e6   :  { %2434 = vmatpush1.bf16.msra.mxu1 %v3946_v5  ;;  %2365 = vmatprep.subr.bf16.mxu0 %v3951_v6  ;;  %v4098_v5 = vld [vmem:[#allocation11 + $0x94] ss:$8 sps:$4 sm:$0xff]   ;;  %v4000_v6 = vld [vmem:[#allocation10 + $0x528] ss:$16 sps:$4 sm:$0xff]  }
 0x1e7   :  { %2435 = vmatprep.subr.bf16.mxu1 %v3954_v7  ;;  %v4096_v7 = vld [vmem:[#allocation11 + $0x90] ss:$8 sps:$4 sm:$0xff]  }
 0x1e9   :  { %2366 = vmatpush1.bf16.msra.mxu0 %v3949_v8  ;;  %v4101_v8 = vld [vmem:[#allocation11 + $0xa4] ss:$8 sps:$4 sm:$0xff]  }
 0x1ea   :  { %2436 = vmatpush1.bf16.msra.mxu1 %v3952_v32  ;;  %2952 = vmatprep.subr.bf16.mxu0 %v4071_v28  ;;  %v4003_v32 = vld [vmem:[#allocation10 + $0x548] ss:$16 sps:$4 sm:$0xff]   ;;  %v4023_v28 = vld [vmem:[#allocation10 + $0x60c] ss:$16 sps:$4 sm:$0xff]  }
 0x1eb   :  { %2437 = vmatprep.subr.bf16.mxu1 %v3957_v10  ;;  %v4099_v10 = vld [vmem:[#allocation11 + $0xa0] ss:$8 sps:$4 sm:$0xff]  }
 0x1ec   :  { %2368 = vmatmul.mubr.bf16.vlgmr.msra.gmra.mrb[24].mxu0 %v4629_v11 }
 0x1ed   :  { %2953 = vmatpush1.bf16.msra.mxu0 %v4069_v27  ;;  %v4018_v27 = vld [vmem:[#allocation10 + $0x5e8] ss:$16 sps:$4 sm:$0xff]  }
 0x1ee   :  { %2438 = vmatpush1.bf16.msra.mxu1 %v3955_v12  ;;  %2954 = vmatprep.subr.bf16.mxu0 %v4074_v38  ;;  %v4104_v12 = vld [vmem:[#allocation11 + $0xb4] ss:$8 sps:$4 sm:$0xff]   ;;  %v4111_v38 = vld [vmem:[#allocation11 + $0xe0] ss:$8 sps:$4 sm:$0xff]  }
 0x1ef   :  { %2439 = vmatprep.subr.bf16.mxu1 %v3960_v15  ;;  %v4006_v15 = vld [vmem:[#allocation10 + $0x568] ss:$16 sps:$4 sm:$0xff]  }
 0x1f1   :  { %2955 = vmatpush1.bf16.msra.mxu0 %v4072_v40  ;;  %v4026_v40 = vld [vmem:[#allocation10 + $0x62c] ss:$16 sps:$4 sm:$0xff]  }
 0x1f2   :  { %2440 = vmatpush1.bf16.msra.mxu1 %v3958_v13  ;;  %2956 = vmatprep.subr.bf16.mxu0 %v4077_v41  ;;  %v4011_v13 = vld [vmem:[#allocation10 + $0x58c] ss:$16 sps:$4 sm:$0xff]  }
 0x1f3   :  { %2441 = vmatprep.subr.bf16.mxu1 %v3963_v17  ;;  %v4102_v17 = vld [vmem:[#allocation11 + $0xb0] ss:$8 sps:$4 sm:$0xff]   ;;  %v4116_v41 = vld [vmem:[#allocation11 + $0xf4] ss:$8 sps:$4 sm:$0xff]  }
 0x1f6   :  { %2442 = vmatpush1.bf16.msra.mxu1 %v3961_v46  ;;  %v4107_v46 = vld [vmem:[#allocation11 + $0xc4] ss:$8 sps:$4 sm:$0xff]  }
 0x1f7   :  { %2443 = vmatprep.subr.bf16.mxu1 %v3966_v19  ;;  %v4009_v19 = vld [vmem:[#allocation10 + $0x588] ss:$16 sps:$4 sm:$0xff]  }
 0x1fa   :  { %2444 = vmatpush1.bf16.msra.mxu1 %v3964_v29  ;;  %v4014_v29 = vld [vmem:[#allocation10 + $0x5ac] ss:$16 sps:$4 sm:$0xff]  }
 0x1fb   :  { %2445 = vmatprep.subr.bf16.mxu1 %v3969_v20  ;;  %v4105_v20 = vld [vmem:[#allocation11 + $0xc0] ss:$8 sps:$4 sm:$0xff]  }
 0x1fe   :  { %2446 = vmatpush1.bf16.msra.mxu1 %v3967_v21  ;;  %v4110_v21 = vld [vmem:[#allocation11 + $0xd4] ss:$8 sps:$4 sm:$0xff]  }
 0x1ff   :  { %2447 = vmatprep.subr.bf16.mxu1 %v3972_v22  ;;  %v4012_v22 = vld [vmem:[#allocation10 + $0x5a8] ss:$16 sps:$4 sm:$0xff]  }
 0x202   :  { %2448 = vmatpush1.bf16.msra.mxu1 %v3970_v23  ;;  %v4017_v23 = vld [vmem:[#allocation10 + $0x5cc] ss:$16 sps:$4 sm:$0xff]  }
 0x203   :  { %2458 = vmatprep.subr.bf16.mxu1 %v3975_v24  ;;  %v4108_v24 = vld [vmem:[#allocation11 + $0xd0] ss:$8 sps:$4 sm:$0xff]  }
 0x205   :  { %2450 = vmatmul.mubr.bf16.vlgmr.msra.gmra.mrb[12].mxu1 %v4578_v16  ;;  %v4075_v16 = vld [vmem:[#allocation11 + $0x20] ss:$8 sps:$4 sm:$0xff]  }
 0x206   :  { %2459 = vmatpush1.bf16.msra.mxu1 %v3973_v25  ;;  %2490 = vmatprep.mubr.bf16.mxu1 %v4609_v18  ;;  %v3987_v18 = vld [vmem:[#allocation10 + $0x48c] ss:$16 sps:$4 sm:$0xff]   ;;  %v4015_v25 = vld [vmem:[#allocation10 + $0x5c8] ss:$16 sps:$4 sm:$0xff]  }
 0x207   :  { %2460 = vmatprep.subr.bf16.mxu1 %v3978_v26  ;;  %2957 = vmatpush1.bf16.msra.mxu0 %v4075_v16  ;;  %v4020_v26 = vld [vmem:[#allocation10 + $0x5ec] ss:$16 sps:$4 sm:$0xff]  }
 0x208   :  { %2958 = vmatprep.subr.bf16.mxu0 %v4080_v43  ;;  %v4029_v16 = vld [vmem:[#allocation10 + $0x64c] ss:$16 sps:$4 sm:$0xff]  }
 0x209   :  { %v4119_v43 = vld [vmem:[#allocation11 + $0x104] ss:$8 sps:$4 sm:$0xff]  }
 0x20a   :  { %2461 = vmatpush1.bf16.msra.mxu1 %v3976_v30  ;;  %v4113_v30 = vld [vmem:[#allocation11 + $0xe4] ss:$8 sps:$4 sm:$0xff]  }
 0x20b   :  { %2462 = vmatprep.subr.bf16.mxu1 %v3981_v39  ;;  %2959 = vmatpush1.bf16.msra.mxu0 %v4078_v3  ;;  %v4021_v39 = vld [vmem:[#allocation10 + $0x608] ss:$16 sps:$4 sm:$0xff]  }
 0x20c   :  { %2960 = vmatprep.subr.bf16.mxu0 %v4083_v44  ;;  %v4030_v3 = vld [vmem:[#allocation10 + $0x668] ss:$16 sps:$4 sm:$0xff]   ;;  %v4035_v44 = vld [vmem:[#allocation10 + $0x68c] ss:$16 sps:$4 sm:$0xff]  }
 0x20e   :  { %2463 = vmatpush1.bf16.msra.mxu1 %v3979_v35  ;;  %v4114_v35 = vld [vmem:[#allocation11 + $0xf0] ss:$8 sps:$4 sm:$0xff]  }
 0x20f   :  { %2464 = vmatprep.subr.bf16.mxu1 %v3984_v42  ;;  %2961 = vmatpush1.bf16.msra.mxu0 %v4081_v47  ;;  %v4024_v42 = vld [vmem:[#allocation10 + $0x628] ss:$16 sps:$4 sm:$0xff]   ;;  %v4041_v47 = vld [vmem:[#allocation10 + $0x6cc] ss:$16 sps:$4 sm:$0xff]  }
 0x210   :  { %2962 = vmatprep.subr.bf16.mxu0 %v4086_v50 }
 0x212   :  { %2465 = vmatpush1.bf16.msra.mxu1 %v3982_v37  ;;  %v4027_v37 = vld [vmem:[#allocation10 + $0x648] ss:$16 sps:$4 sm:$0xff]  }
 0x213   :  { %2466 = vmatprep.subr.bf16.mxu1 %v3987_v18  ;;  %2963 = vmatpush1.bf16.msra.mxu0 %v4084_v54  ;;  %v4032_v18 = vld [vmem:[#allocation10 + $0x66c] ss:$16 sps:$4 sm:$0xff]   ;;  %v4039_v54 = vld [vmem:[#allocation10 + $0x6c8] ss:$16 sps:$4 sm:$0xff]  }
 0x214   :  { %2964 = vmatprep.subr.bf16.mxu0 %v4089_v56  ;;  %v4044_v56 = vld [vmem:[#allocation10 + $0x6ec] ss:$16 sps:$4 sm:$0xff]  }
 0x216   :  { %2467 = vmatpush1.bf16.msra.mxu1 %v3985_v45  ;;  %v4038_v45 = vld [vmem:[#allocation10 + $0x6ac] ss:$16 sps:$4 sm:$0xff]  }
 0x217   :  { %2468 = vmatprep.subr.bf16.mxu1 %v3990_v14  ;;  %2965 = vmatpush1.bf16.msra.mxu0 %v4087_v48  ;;  %v4045_v48 = vld [vmem:[#allocation10 + $0x708] ss:$16 sps:$4 sm:$0xff]  }
 0x218   :  { %2966 = vmatprep.subr.bf16.mxu0 %v4092_v59  ;;  %v4050_v59 = vld [vmem:[#allocation10 + $0x72c] ss:$16 sps:$4 sm:$0xff]  }
 0x21a   :  { %2469 = vmatpush1.bf16.msra.mxu1 %v3988_v51 }
 0x21b   :  { %2470 = vmatprep.subr.bf16.mxu1 %v3993_v52  ;;  %2967 = vmatpush1.bf16.msra.mxu0 %v4090_v61  ;;  %v4051_v61 = vld [vmem:[#allocation10 + $0x748] ss:$16 sps:$4 sm:$0xff]  }
 0x21c   :  { %2968 = vmatprep.subr.bf16.mxu0 %v4095_v62  ;;  %v4056_v62 = vld [vmem:[#allocation10 + $0x76c] ss:$16 sps:$4 sm:$0xff]  }
 0x21e   :  { %2471 = vmatpush1.bf16.msra.mxu1 %v3991_v57  ;;  %v4042_v57 = vld [vmem:[#allocation10 + $0x6e8] ss:$16 sps:$4 sm:$0xff]  }
 0x21f   :  { %2472 = vmatprep.subr.bf16.mxu1 %v3996_v58  ;;  %2969 = vmatpush1.bf16.msra.mxu0 %v4093_v2  ;;  %v4047_v58 = vld [vmem:[#allocation10 + $0x70c] ss:$16 sps:$4 sm:$0xff]   ;;  %v4057_v2 = vld [vmem:[#allocation10 + $0x788] ss:$16 sps:$4 sm:$0xff]  }
 0x220   :  { %2970 = vmatprep.subr.bf16.mxu0 %v4098_v5  ;;  %v4062_v5 = vld [vmem:[#allocation10 + $0x7ac] ss:$16 sps:$4 sm:$0xff]  }
 0x222   :  { %2473 = vmatpush1.bf16.msra.mxu1 %v3994_v60  ;;  %v4048_v60 = vld [vmem:[#allocation10 + $0x728] ss:$16 sps:$4 sm:$0xff]  }
 0x223   :  { %2474 = vmatprep.subr.bf16.mxu1 %v3999_v49  ;;  %2971 = vmatpush1.bf16.msra.mxu0 %v4096_v7  ;;  %v4053_v49 = vld [vmem:[#allocation10 + $0x74c] ss:$16 sps:$4 sm:$0xff]   ;;  %v4063_v7 = vld [vmem:[#allocation10 + $0x7c8] ss:$16 sps:$4 sm:$0xff]  }
 0x224   :  { %2972 = vmatprep.subr.bf16.mxu0 %v4101_v8  ;;  %v4068_v8 = vld [vmem:[#allocation10 + $0x7ec] ss:$16 sps:$4 sm:$0xff]  }
 0x226   :  { %2475 = vmatpush1.bf16.msra.mxu1 %v3997_v63  ;;  %v4054_v63 = vld [vmem:[#allocation10 + $0x768] ss:$16 sps:$4 sm:$0xff]  }
 0x227   :  { %2476 = vmatprep.subr.bf16.mxu1 %v4002_v1  ;;  %2973 = vmatpush1.bf16.msra.mxu0 %v4099_v10  ;;  %v4059_v1 = vld [vmem:[#allocation10 + $0x78c] ss:$16 sps:$4 sm:$0xff]  }
 0x228   :  { %2974 = vmatprep.subr.bf16.mxu0 %v4104_v12 }
 0x22a   :  { %2477 = vmatpush1.bf16.msra.mxu1 %v4000_v6  ;;  %v4060_v6 = vld [vmem:[#allocation10 + $0x7a8] ss:$16 sps:$4 sm:$0xff]  }
 0x22b   :  { %2478 = vmatprep.subr.bf16.mxu1 %v4005_v34  ;;  %2975 = vmatpush1.bf16.msra.mxu0 %v4102_v17  ;;  %v4065_v34 = vld [vmem:[#allocation10 + $0x7cc] ss:$16 sps:$4 sm:$0xff]  }
 0x22c   :  { %2976 = vmatprep.subr.bf16.mxu0 %v4107_v46 }
 0x22e   :  { %2479 = vmatpush1.bf16.msra.mxu1 %v4003_v32  ;;  %v4066_v32 = vld [vmem:[#allocation10 + $0x7e8] ss:$16 sps:$4 sm:$0xff]  }
 0x22f   :  { %2480 = vmatprep.subr.bf16.mxu1 %v4008_v9  ;;  %2977 = vmatpush1.bf16.msra.mxu0 %v4105_v20  ;;  %v4640_v9 = vld [vmem:[%s4676_s6] sm:$0xf] }
 0x230   :  { %2978 = vmatprep.subr.bf16.mxu0 %v4110_v21  ;;  %v915_v10 = vrot.slane %v4640_v9, %v4586_v33  ;;  %v919_v12 = vrot.slane %v4640_v9, %v4592_v36 }
 0x232   :  { %2481 = vmatpush1.bf16.msra.mxu1 %v4006_v15 }
 0x233   :  { %2482 = vmatprep.subr.bf16.mxu1 %v4011_v13  ;;  %2979 = vmatpush1.bf16.msra.mxu0 %v4108_v24 }
 0x234   :  { %2980 = vmatprep.subr.bf16.mxu0 %v4113_v30  ;;  %v4120_v30 = vld [vmem:[#allocation11 + $0x110] ss:$8 sps:$4 sm:$0xff]  }
 0x236   :  { %2483 = vmatpush1.bf16.msra.mxu1 %v4009_v19 }
 0x237   :  { %2484 = vmatprep.subr.bf16.mxu1 %v4014_v29  ;;  %2981 = vmatpush1.bf16.msra.mxu0 %v4111_v38  ;;  %v4125_v38 = vld [vmem:[#allocation11 + $0x124] ss:$8 sps:$4 sm:$0xff]  }
 0x238   :  { %2982 = vmatprep.subr.bf16.mxu0 %v4116_v41  ;;  %v4126_v41 = vld [vmem:[#allocation11 + $0x130] ss:$8 sps:$4 sm:$0xff]  }
 0x23a   :  { %2485 = vmatpush1.bf16.msra.mxu1 %v4012_v22 }
 0x23b   :  { %2486 = vmatprep.subr.bf16.mxu1 %v4017_v23  ;;  %2983 = vmatpush1.bf16.msra.mxu0 %v4114_v35  ;;  %v4131_v35 = vld [vmem:[#allocation11 + $0x144] ss:$8 sps:$4 sm:$0xff]  }
 0x23c   :  { %2993 = vmatprep.subr.bf16.mxu0 %v4119_v43  ;;  %v4132_v43 = vld [vmem:[#allocation11 + $0x150] ss:$8 sps:$4 sm:$0xff]  }
 0x23e   :  { %2487 = vmatpush1.bf16.msra.mxu1 %v4015_v25 }
 0x23f   :  { %2488 = vmatprep.subr.bf16.mxu1 %v4020_v26  ;;  %v4117_v26 = vld [vmem:[#allocation11 + $0x100] ss:$8 sps:$4 sm:$0xff]  }
 0x242   :  { %2489 = vmatpush1.bf16.msra.mxu1 %v4018_v27 }
 0x243   :  { %2499 = vmatprep.subr.bf16.mxu1 %v4023_v28  ;;  %v4122_v28 = vld [vmem:[#allocation11 + $0x114] ss:$8 sps:$4 sm:$0xff]  }
 0x245   :  { %2491 = vmatmul.mubr.bf16.vlgmr.msra.gmra.mrb[12].mxu1 %v4618_v0  ;;  %v4033_v0 = vld [vmem:[#allocation10 + $0x688] ss:$16 sps:$4 sm:$0xff]  }
 0x246   :  { %2500 = vmatpush1.bf16.msra.mxu1 %v4021_v39  ;;  %2531 = vmatprep.mubr.bf16.mxu1 %v4620_v4  ;;  %v4036_v4 = vld [vmem:[#allocation10 + $0x6a8] ss:$16 sps:$4 sm:$0xff]  }
 0x247   :  { %2501 = vmatprep.subr.bf16.mxu1 %v4026_v40  ;;  %v4123_v39 = vld [vmem:[#allocation11 + $0x120] ss:$8 sps:$4 sm:$0xff]   ;;  %v4128_v40 = vld [vmem:[#allocation11 + $0x134] ss:$8 sps:$4 sm:$0xff]  }
 0x24a   :  { %2502 = vmatpush1.bf16.msra.mxu1 %v4024_v42  ;;  %v4129_v42 = vld [vmem:[#allocation11 + $0x140] ss:$8 sps:$4 sm:$0xff]  }
 0x24b   :  { %2503 = vmatprep.subr.bf16.mxu1 %v4029_v16  ;;  %v4134_v16 = vld [vmem:[#allocation11 + $0x154] ss:$8 sps:$4 sm:$0xff]  }
 0x24e   :  { %2504 = vmatpush1.bf16.msra.mxu1 %v4027_v37  ;;  %v4137_v37 = vld [vmem:[#allocation11 + $0x164] ss:$8 sps:$4 sm:$0xff]  }
 0x24f   :  { %2505 = vmatprep.subr.bf16.mxu1 %v4032_v18  ;;  %v4135_v18 = vld [vmem:[#allocation11 + $0x160] ss:$8 sps:$4 sm:$0xff]  }
 0x252   :  { %2506 = vmatpush1.bf16.msra.mxu1 %v4030_v3  ;;  %v4140_v3 = vld [vmem:[#allocation11 + $0x174] ss:$8 sps:$4 sm:$0xff]  }
 0x253   :  { %2507 = vmatprep.subr.bf16.mxu1 %v4035_v44  ;;  %v4138_v44 = vld [vmem:[#allocation11 + $0x170] ss:$8 sps:$4 sm:$0xff]  }
 0x256   :  { %2508 = vmatpush1.bf16.msra.mxu1 %v4033_v0  ;;  %v4165_v0 = vld [vmem:[#allocation13 + $0x40] sm:$0xff]  }
 0x257   :  { %v2246_v14 = vpop.f32.mrb[8].mxu1  ;;  %2509 = vmatprep.subr.bf16.mxu1 %v4038_v45  ;;  %v4166_v45 = vld [vmem:[#allocation13] sm:$0xff]  }
 0x258   :  { %v2248_v50 = vpop.f32.mrb[9].mxu1  ;;  %v2247_v15 = vadd.f32 %v2246_v14, %v915_v10  ;;  %v4143_v14 = vld [vmem:[#allocation11 + $0x184] ss:$8 sps:$4 sm:$0xff]   ;;  %v4162_v10 = vld [vmem:[#allocation11 + $0x1f0] ss:$8 sps:$4 sm:$0xff]  }
 0x259   :  { %v2250_v51 = vpop.f32.mrb[10].mxu1  ;;  %v2249_v13 = vadd.f32 %v2248_v50, %v919_v12  ;;  %v4141_v50 = vld [vmem:[#allocation11 + $0x180] ss:$8 sps:$4 sm:$0xff]   ;;  %v923_v12 = vrot.slane %v4640_v9, %v584_v53  ;;  %v4177_v53 = vld [vmem:[#allocation13 + $0x70] sm:$0xff]  }
 0x25a   :  { %2510 = vmatpush1.bf16.msra.mxu1 %v4036_v4  ;;  %v2251_v52 = vpop.f32.mrb[11].mxu1  ;;  %v4167_v4 = vld [vmem:[#allocation13 + $0x48] sm:$0xff]   ;;  %v4169_v51 = vld [vmem:[#allocation13 + $0x50] sm:$0xff]  }
 0x25b   :  { %2511 = vmatprep.subr.bf16.mxu1 %v4041_v47  ;;  %v4168_v47 = vld [vmem:[#allocation13 + $0x8] sm:$0xff]   ;;  %v4146_v52 = vld [vmem:[#allocation11 + $0x194] ss:$8 sps:$4 sm:$0xff]  }
 0x25e   :  { %2512 = vmatpush1.bf16.msra.mxu1 %v4039_v54  ;;  %v4170_v54 = vld [vmem:[#allocation13 + $0x10] sm:$0xff]  }
 0x25f   :  { %2513 = vmatprep.subr.bf16.mxu1 %v4044_v56  ;;  %v4144_v56 = vld [vmem:[#allocation11 + $0x190] ss:$8 sps:$4 sm:$0xff]  }
 0x262   :  { %2514 = vmatpush1.bf16.msra.mxu1 %v4042_v57  ;;  %v4171_v57 = vld [vmem:[#allocation13 + $0x58] sm:$0xff]  }
 0x263   :  { %2515 = vmatprep.subr.bf16.mxu1 %v4047_v58  ;;  %v4149_v58 = vld [vmem:[#allocation11 + $0x1a4] ss:$8 sps:$4 sm:$0xff]  }
 0x266   :  { %2516 = vmatpush1.bf16.msra.mxu1 %v4045_v48  ;;  %v4172_v48 = vld [vmem:[#allocation13 + $0x18] sm:$0xff]  }
 0x267   :  { %2517 = vmatprep.subr.bf16.mxu1 %v4050_v59  ;;  %v4147_v59 = vld [vmem:[#allocation11 + $0x1a0] ss:$8 sps:$4 sm:$0xff]  }
 0x26a   :  { %2518 = vmatpush1.bf16.msra.mxu1 %v4048_v60  ;;  %v4173_v60 = vld [vmem:[#allocation13 + $0x60] sm:$0xff]  }
 0x26b   :  { %2519 = vmatprep.subr.bf16.mxu1 %v4053_v49  ;;  %v4152_v49 = vld [vmem:[#allocation11 + $0x1b4] ss:$8 sps:$4 sm:$0xff]  }
 0x26e   :  { %2520 = vmatpush1.bf16.msra.mxu1 %v4051_v61  ;;  %v4174_v61 = vld [vmem:[#allocation13 + $0x20] sm:$0xff]  }
 0x26f   :  { %2521 = vmatprep.subr.bf16.mxu1 %v4056_v62  ;;  %v4150_v62 = vld [vmem:[#allocation11 + $0x1b0] ss:$8 sps:$4 sm:$0xff]  }
 0x272   :  { %2522 = vmatpush1.bf16.msra.mxu1 %v4054_v63  ;;  %v4175_v63 = vld [vmem:[#allocation13 + $0x68] sm:$0xff]  }
 0x273   :  { %2523 = vmatprep.subr.bf16.mxu1 %v4059_v1  ;;  %v4155_v1 = vld [vmem:[#allocation11 + $0x1c4] ss:$8 sps:$4 sm:$0xff]  }
 0x276   :  { %2524 = vmatpush1.bf16.msra.mxu1 %v4057_v2  ;;  %v4176_v2 = vld [vmem:[#allocation13 + $0x28] sm:$0xff]  }
 0x277   :  { %2525 = vmatprep.subr.bf16.mxu1 %v4062_v5  ;;  %v4153_v5 = vld [vmem:[#allocation11 + $0x1c0] ss:$8 sps:$4 sm:$0xff]  }
 0x27a   :  { %2526 = vmatpush1.bf16.msra.mxu1 %v4060_v6  ;;  %v4158_v6 = vld [vmem:[#allocation11 + $0x1d4] ss:$8 sps:$4 sm:$0xff]  }
 0x27b   :  { %2527 = vmatprep.subr.bf16.mxu1 %v4065_v34  ;;  %v4156_v34 = vld [vmem:[#allocation11 + $0x1d0] ss:$8 sps:$4 sm:$0xff]  }
 0x27e   :  { %2528 = vmatpush1.bf16.msra.mxu1 %v4063_v7  ;;  %v4161_v7 = vld [vmem:[#allocation11 + $0x1e4] ss:$8 sps:$4 sm:$0xff]  }
 0x27f   :  { %2529 = vmatprep.subr.bf16.mxu1 %v4068_v8  ;;  %v4159_v8 = vld [vmem:[#allocation11 + $0x1e0] ss:$8 sps:$4 sm:$0xff]  }
 0x282   :  { %2530 = vmatpush1.bf16.msra.mxu1 %v4066_v32  ;;  %v4164_v32 = vld [vmem:[#allocation11 + $0x1f4] ss:$8 sps:$4 sm:$0xff]  }
 0x283   :  { %3607 = vmatprep.subr.bf16.mxu1 %v4165_v0  ;;  %v3590_v0 = vld [vmem:[%s4680_s10] ss:$0 sm:$0xff] }
 0x285   :  { %2532 = vmatmul.mubr.bf16.vlgmr.msra.gmra.mrb[12].mxu1 %v4629_v11 }
 0x286   :  { %3608 = vmatpush3.bf16.msra.mxu1 %v4166_v45 }
 0x287   :  { %3609 = vmatprep.subr.bf16.mxu1 %v4167_v4 }
 0x28a   :  { %3610 = vmatpush3.bf16.msra.mxu1 %v4168_v47 }
 0x28b   :  { %3611 = vmatprep.subr.bf16.mxu1 %v4169_v51 }
 0x28e   :  { %3612 = vmatpush3.bf16.msra.mxu1 %v4170_v54 }
 0x28f   :  { %3613 = vmatprep.subr.bf16.mxu1 %v4171_v57 }
 0x292   :  { %3614 = vmatpush3.bf16.msra.mxu1 %v4172_v48 }
 0x293   :  { %3615 = vmatprep.subr.bf16.mxu1 %v4173_v60 }
 0x296   :  { %3616 = vmatpush3.bf16.msra.mxu1 %v4174_v61 }
 0x297   :  { %3617 = vmatprep.subr.bf16.mxu1 %v4175_v63 }
 0x29a   :  { %3618 = vmatpush3.bf16.msra.mxu1 %v4176_v2 }
 0x29b   :  { %3619 = vmatprep.subr.bf16.mxu1 %v4177_v53 }
 0x29e   :  { %3620 = vmatpush3.bf16.msra.mxu1 %v4178_v31 }
 0x2bf   :  { %v2369_v17 = vpop.f32.mrb[24].mxu0 }
 0x2c0   :  { %v3630_v46 = vadd.f32 %v2369_v17, %v2247_v15  ;;  %v2371_v19 = vpop.f32.mrb[25].mxu0  ;;  %v927_v15 = vrot.slane %v4640_v9, %v588_v55  ;;  %v4179_v55 = vld [vmem:[#allocation13 + $0x78] sm:$0xff]  }
 0x2c1   :  { %v3632_v29 = vadd.f32 %v2371_v19, %v2249_v13  ;;  %v2373_v20 = vpop.f32.mrb[26].mxu0  ;;  %v4180_v9 = vld [vmem:[#allocation13 + $0x38] sm:$0xff]   ;;  %3621 = vmatprep.subr.bf16.mxu1 %v4179_v55 }
 0x2c2   :  { %vm2540_vm11 = vcmp.gt.f32.partialorder %v3630_v46, 0.0  ;;  %v2544_v11 = vmul.f32 0.01, %v3630_v46  ;;  %v2374_v21 = vpop.f32.mrb[27].mxu0  ;;  %3622 = vmatpush3.bf16.msra.mxu1 %v4180_v9 }
 0x2c3   :  { %vm2541_vm12 = vcmp.gt.f32.partialorder %v3632_v29, 0.0  ;;  %v2545_v22 = vmul.f32 0.01, %v3632_v29 }
 0x2c4   :  { %v2548_v23 = vsel %vm2540_vm11, %v3630_v46, %v2544_v11 }
 0x2c5   :  { %v2549_v24 = vsel %vm2541_vm12, %v3632_v29, %v2545_v22  ;;  %v2552_v27 = vpack.c.bf16 %v2548_v23, %v2548_v23 }
 0x2c6   :  { %v2553_v25 = vpack.c.bf16 %v2549_v24, %v2549_v24 }
 0x2c8   :  { %2984 = vmatprep.mubr.bf16.mxu0 %v2553_v25 }
 0x2c9   :  { %2985 = vmatmul.mubr.bf16.vlgmr.msra.gmra.mrb[28].mxu0 %v2552_v27 }
 0x2ca   :  { %2994 = vmatpush1.bf16.msra.mxu0 %v4117_v26  ;;  %v2620_v26 = vld [vmem:[%s4678_s8] sm:$0x3] }
 0x2cb   :  { %2995 = vmatprep.subr.bf16.mxu0 %v4122_v28  ;;  %v2625_v27 = vrot.slane %v2620_v26, %v4586_v33  ;;  %v2629_v28 = vrot.slane %v2620_v26, %v4592_v36  ;;  %v3220_v36 = vld [vmem:[%s4681_s11] sm:$0x1] }
 0x2cc   :  { %v3221_v4 = vunpack.c.l.bf16 %v3220_v36 }
 0x2ce   :  { %2996 = vmatpush1.bf16.msra.mxu0 %v4120_v30 }
 0x2cf   :  { %2997 = vmatprep.subr.bf16.mxu0 %v4125_v38 }
 0x2d2   :  { %2998 = vmatpush1.bf16.msra.mxu0 %v4123_v39 }
 0x2d3   :  { %2999 = vmatprep.subr.bf16.mxu0 %v4128_v40 }
 0x2d6   :  { %3000 = vmatpush1.bf16.msra.mxu0 %v4126_v41 }
 0x2d7   :  { %3001 = vmatprep.subr.bf16.mxu0 %v4131_v35 }
 0x2da   :  { %3002 = vmatpush1.bf16.msra.mxu0 %v4129_v42 }
 0x2db   :  { %3003 = vmatprep.subr.bf16.mxu0 %v4134_v16 }
 0x2de   :  { %3004 = vmatpush1.bf16.msra.mxu0 %v4132_v43 }
 0x2df   :  { %3005 = vmatprep.subr.bf16.mxu0 %v4137_v37 }
 0x2e2   :  { %3006 = vmatpush1.bf16.msra.mxu0 %v4135_v18 }
 0x2e3   :  { %3007 = vmatprep.subr.bf16.mxu0 %v4140_v3 }
 0x2e6   :  { %3008 = vmatpush1.bf16.msra.mxu0 %v4138_v44 }
 0x2e7   :  { %3009 = vmatprep.subr.bf16.mxu0 %v4143_v14 }
 0x2ea   :  { %3010 = vmatpush1.bf16.msra.mxu0 %v4141_v50 }
 0x2eb   :  { %3011 = vmatprep.subr.bf16.mxu0 %v4146_v52  ;;  %v3225_v52 = vrot.slane %v3221_v4, %v4586_v33 }
 0x2ee   :  { %3012 = vmatpush1.bf16.msra.mxu0 %v4144_v56 }
 0x2ef   :  { %3013 = vmatprep.subr.bf16.mxu0 %v4149_v58  ;;  %v3230_v58 = vstv %s4682_s12 }
 0x2f2   :  { %3014 = vmatpush1.bf16.msra.mxu0 %v4147_v59 }
 0x2f3   :  { %3015 = vmatprep.subr.bf16.mxu0 %v4152_v49 }
 0x2f6   :  { %3016 = vmatpush1.bf16.msra.mxu0 %v4150_v62 }
 0x2f7   :  { %3017 = vmatprep.subr.bf16.mxu0 %v4155_v1 }
 0x2fa   :  { %3018 = vmatpush1.bf16.msra.mxu0 %v4153_v5 }
 0x2fb   :  { %3019 = vmatprep.subr.bf16.mxu0 %v4158_v6 }
 0x2fe   :  { %3020 = vmatpush1.bf16.msra.mxu0 %v4156_v34 }
 0x2ff   :  { %3021 = vmatprep.subr.bf16.mxu0 %v4161_v7 }
 0x302   :  { %3022 = vmatpush1.bf16.msra.mxu0 %v4159_v8 }
 0x303   :  { %3023 = vmatprep.subr.bf16.mxu0 %v4164_v32 }
 0x306   :  { %3024 = vmatpush1.bf16.msra.mxu0 %v4162_v10 }
 0x358   :  { %v2533_v13 = vpop.f32.mrb[12].mxu1 }
 0x359   :  { %v3633_v17 = vadd.f32 %v2533_v13, %v923_v12  ;;  %v2535_v46 = vpop.f32.mrb[13].mxu1 }
 0x35a   :  { %v3634_v19 = vadd.f32 %v2535_v46, %v927_v15  ;;  %v2537_v29 = vpop.f32.mrb[14].mxu1 }
 0x35b   :  { %vm2542_vm13 = vcmp.gt.f32.partialorder %v3633_v17, 0.0  ;;  %v2546_v20 = vmul.f32 0.01, %v3633_v17  ;;  %v2538_v11 = vpop.f32.mrb[15].mxu1 }
 0x35c   :  { %vm2543_vm14 = vcmp.gt.f32.partialorder %v3634_v19, 0.0  ;;  %v2547_v21 = vmul.f32 0.01, %v3634_v19 }
 0x35d   :  { %v2550_v22 = vsel %vm2542_vm13, %v3633_v17, %v2546_v20 }
 0x35e   :  { %v2551_v23 = vsel %vm2543_vm14, %v3634_v19, %v2547_v21  ;;  %v2554_v25 = vpack.c.bf16 %v2550_v22, %v2550_v22 }
 0x35f   :  { %v2555_v24 = vpack.c.bf16 %v2551_v23, %v2551_v23 }
 0x361   :  { %3025 = vmatprep.mubr.bf16.mxu0 %v2555_v24 }
 0x362   :  { %3026 = vmatmul.mubr.bf16.vlgmr.msra.gmra.mrb[28].mxu0 %v2554_v25 }
 0x435   :  { %v3027_v30 = vpop.f32.mrb[28].mxu0 }
 0x436   :  { %v3635_v38 = vadd.f32 %v3027_v30, %v2625_v27  ;;  %v3029_v39 = vpop.f32.mrb[29].mxu0 }
 0x437   :  { %v3636_v40 = vadd.f32 %v3029_v39, %v2629_v28  ;;  %v3031_v41 = vpop.f32.mrb[30].mxu0 }
 0x438   :  { %vm3034_vm15 = vcmp.gt.f32.partialorder %v3635_v38, 0.0  ;;  %v3036_v35 = vmul.f32 0.01, %v3635_v38  ;;  %v3032_v42 = vpop.f32.mrb[31].mxu0 }
 0x439   :  { %vm3035_vm0 = vcmp.gt.f32.partialorder %v3636_v40, 0.0  ;;  %v3037_v16 = vmul.f32 0.01, %v3636_v40 }
 0x43a   :  { %v3038_v43 = vsel %vm3034_vm15, %v3635_v38, %v3036_v35 }
 0x43b   :  { %v3039_v37 = vsel %vm3035_vm0, %v3636_v40, %v3037_v16  ;;  %v3040_v3 = vpack.c.bf16 %v3038_v43, %v3038_v43 }
 0x43c   :  { %v3041_v18 = vpack.c.bf16 %v3039_v37, %v3039_v37 }
 0x43e   :  { %3209 = vmatprep.mubr.bf16.mxu1 %v3041_v18 }
 0x43f   :  { %3210 = vmatmul.mubr.bf16.vlgmr.msra.gmra.mrb[16].mxu1 %v3040_v3 }
 0x512   :  { %v3623_v44 = vpop.f32.mrb[16].mxu1 }
 0x513   :  { %v3624_v45 = vpop.f32.mrb[17].mxu1 }
 0x514   :  { %v3625_v14 = vadd.f32 %v3624_v45, %v3623_v44  ;;  %v3626_v47 = vpop.f32.mrb[18].mxu1 }
 0x515   :  { %v3627_v50 = vpop.f32.mrb[19].mxu1 }
 0x516   :  { %v3212_v51 = vadd.f32 %v3625_v14, %v3590_v0 }
 0x518   :  { %vm3217_vm1 = vcmp.gt.f32.partialorder %v3212_v51, 0.0  ;;  %v3218_v54 = vmul.f32 0.01, %v3212_v51 }
 0x51a   :  { %v3219_v56 = vsel %vm3217_vm1, %v3212_v51, %v3218_v54 }
 0x51b   :  { %v3226_v57 = vmul.f32 %v3225_v52, %v3219_v56 }
 0x51d   :  { %3227 = vadd.xlane.f32.xlu0 %v3226_v57 }
 0x5aa   :  { %v3228_v48 = vpop.xlane.xlu0 %3227 }
 0x5ab   :  { %v3231_v59 = vadd.f32 %v3230_v58, %v3228_v48 }
 0x5ad   :  { %3233 = vst.msk [vmem:[%s4683_s13] sm:$0xff] %vm3232_vm2, %v3231_v59 }
 0x5ae   :  { %3238 = vsyncpa [#allocation4], 1 }
 0x5af   :  { %3239 = vsyncpa [#allocation6], 1 }
 0x5b0   :  { %3240 = vsyncpa [#allocation9], 1 }
 0x5b1   :  { %3241 = vsyncpa [#allocation12], 1 }

</bundles_post_ra>
